<compile_context>
chip_gen: v7x
topology: tpu7x:2x2x1
jax: 0.10.0
libtpu: 0.0.40
codegen_flags: <defaults>
</compile_context>

<pallas_src>
import functools

import jax
import jax.numpy as jnp
import numpy as np
from jax.experimental import pallas as pl
from jax.experimental.pallas import tpu as pltpu

EPS = 1e-5                     # nn.InstanceNorm2d default eps
_MXU_DTYPE = jnp.float32       # set to jnp.bfloat16 on v6e/v7x for 2x MXU rate
                               # (accumulation stays f32 via preferred_element_type)


# ----------------------------------------------------------------------------- kernel
def _residual_block_kernel(alpha_ref, x_ref, w1_ref, w2_ref, out_ref, *, H, W, C):
    """Fused pad->conv1->IN->PReLU->pad->conv2->IN->(+x)->PReLU for one batch element.

    Working layout is lane-dense (H, W*C): channel c of image column w sits on
    lane w*C + c. Reflection padding becomes static sublane / lane shifts.
    """
    WC = W * C
    inv_hw = 1.0 / float(H * W)
    x = x_ref[0]                      # (H, W*C) f32
    alpha = alpha_ref[0]              # scalar from SMEM (shared PReLU weight)

    def group_mean(v):
        # Per-channel mean over (H, W); channel c lives on lanes {w*C + c, all w}.
        if (W & (W - 1)) == 0:
            # power-of-two W: log2(W) lane rotations (XLU slot, cheap) make every
            # lane hold its channel's full sum over w; then one sublane reduce.
            s = v
            shift = C
            while shift < WC:
                s = s + pltpu.roll(s, shift, axis=1)
                shift *= 2
            return jnp.sum(s, axis=0, keepdims=True) * inv_hw
        # general-W fallback (not traced for the test shapes)
        s = jnp.sum(v, axis=0, keepdims=True).reshape(W, C)
        per_c = jnp.sum(s, axis=0, keepdims=True)          # (1, C)
        return jnp.tile(per_c, (1, W)) * inv_hw            # (1, W*C)

    def conv_instnorm(inp, w_ref):
        # ReflectionPad2d(1) realized as shifts (no padded buffer is materialized):
        up = jnp.concatenate([inp[1:2], inp[:H - 1]], axis=0)        # row h-1 (reflect @ h=0)
        dn = jnp.concatenate([inp[1:], inp[H - 2:H - 1]], axis=0)    # row h+1 (reflect @ h=H-1)
        taps = []
        for r in (up, inp, dn):                                      # dy = 0, 1, 2
            left = jnp.concatenate([r[:, C:2 * C], r[:, :WC - C]], axis=1)        # col w-1
            right = jnp.concatenate([r[:, C:], r[:, WC - 2 * C:WC - C]], axis=1)  # col w+1
            taps.extend((left, r, right))                            # dx = 0, 1, 2
        patches = jnp.concatenate(taps, axis=1)                      # (H, 9*W*C) im2col
        # Single MXU push against the block-diagonal im2col weight (9*W*C, W*C).
        acc = jnp.dot(patches.astype(_MXU_DTYPE), w_ref[...].astype(_MXU_DTYPE),
                      preferred_element_type=jnp.float32)            # (H, W*C)
        # InstanceNorm2d (no affine, biased variance). Conv bias is omitted on
        # purpose: a per-channel constant is exactly cancelled by the mean here.
        mean = group_mean(acc)
        cent = acc - mean
        var = group_mean(cent * cent)
        return cent * jax.lax.rsqrt(var + EPS)

    y = conv_instnorm(x, w1_ref)
    y = jnp.where(y >= 0, y, alpha * y)             # PReLU (shared module)
    z = conv_instnorm(y, w2_ref) + x                # + residual
    out_ref[0] = jnp.where(z >= 0, z, alpha * z)    # same PReLU (shared alpha)


# ----------------------------------------------------------------------------- wrapper
def prepare_conv_weight(w_oihw, W):
    """One-time prep (hoisted out of the forward):
    PyTorch conv weight (Cout, Cin, 3, 3) -> block-diagonal im2col weight of shape
    (K*K*W*Cin, W*Cout) matching the lane-dense (H, W*C) layout used in the kernel.
    """
    Cout, Cin, K, _ = w_oihw.shape
    w_t = jnp.transpose(w_oihw, (2, 3, 1, 0)).reshape(K * K, Cin, Cout)   # (tap, ci, co)
    eye_w = jnp.eye(W, dtype=w_oihw.dtype)                                # (w, w2)
    wf = jnp.einsum("ab,tic->taibc", eye_w, w_t)                          # (tap, w, ci, w2, co)
    return wf.reshape(K * K * W * Cin, W * Cout)


@jax.jit
def residual_block(x_nchw, w1_full, w2_full, alpha):
    """Forward pass. x_nchw: (B, C, H, W) f32 (PyTorch layout); weights pre-prepared."""
    B, C, H, W = x_nchw.shape
    WC = W * C
    # NCHW -> lane-dense (B, H, W*C). (At a real integration boundary one would
    # accept channels-last input directly and this transpose disappears.)
    x = jnp.transpose(x_nchw, (0, 2, 3, 1)).reshape(B, H, WC)

    # TODO(synk): for large H/W (e.g. 256x256xC=128 on v7x's 64 MiB VMEM) add a
    # row-strip grid axis with 1-row halos instead of whole-image blocks.
    out = pl.pallas_call(
        functools.partial(_residual_block_kernel, H=H, W=W, C=C),
        out_shape=jax.ShapeDtypeStruct((B, H, WC), jnp.float32),
        grid=(B,),
        in_specs=[
            pl.BlockSpec(memory_space=pltpu.MemorySpace.SMEM),     # alpha (1,)
            pl.BlockSpec((1, H, WC), lambda b: (b, 0, 0)),         # input slab
            pl.BlockSpec((9 * WC, WC), lambda b: (0, 0)),          # conv1 im2col weight
            pl.BlockSpec((9 * WC, WC), lambda b: (0, 0)),          # conv2 im2col weight
        ],
        out_specs=pl.BlockSpec((1, H, WC), lambda b: (b, 0, 0)),
        compiler_params=pltpu.CompilerParams(dimension_semantics=("parallel",)),
    )(alpha, x, w1_full, w2_full)

    return jnp.transpose(out.reshape(B, H, W, C), (0, 3, 1, 2))    # back to NCHW


# ----------------------------------------------------------------------------- reference
def _reference(x, w1, w2, alpha):
    """Pure-JAX reference of the PyTorch module (bias omitted: cancelled by IN)."""
    def conv(inp, w):
        xp = jnp.pad(inp, ((0, 0), (0, 0), (1, 1), (1, 1)), mode="reflect")
        return jax.lax.conv_general_dilated(
            xp, w, (1, 1), "VALID", dimension_numbers=("NCHW", "OIHW", "NCHW"))

    def inorm(v):
        m = jnp.mean(v, axis=(2, 3), keepdims=True)
        var = jnp.mean((v - m) ** 2, axis=(2, 3), keepdims=True)
        return (v - m) * jax.lax.rsqrt(var + EPS)

    def prelu(v):
        return jnp.where(v >= 0, v, alpha[0] * v)

    y = prelu(inorm(conv(x, w1)))
    return prelu(inorm(conv(y, w2)) + x)


# ----------------------------------------------------------------------------- main
if __name__ == "__main__":
    # Residual add requires in_channels == out_channels; C=8, W=16 -> W*C = 128
    # (exactly lane-dense).
    B, C, H, W = 2, 8, 16, 16
    key = jax.random.PRNGKey(0)
    k1, k2, k3 = jax.random.split(key, 3)

    x = jax.random.normal(k1, (B, C, H, W), jnp.float32)
    w1 = jax.random.normal(k2, (C, C, 3, 3), jnp.float32) * 0.1
    w2 = jax.random.normal(k3, (C, C, 3, 3), jnp.float32) * 0.1
    # Conv biases omitted: InstanceNorm (no affine) cancels them exactly.
    alpha = jnp.full((1,), 0.25, jnp.float32)   # nn.PReLU() default, shared by both uses

    # One-time parameter preparation (outside the jitted forward).
    w1_full = jax.block_until_ready(prepare_conv_weight(w1, W))
    w2_full = jax.block_until_ready(prepare_conv_weight(w2, W))

    out = residual_block(x, w1_full, w2_full, alpha)
    out = jax.block_until_ready(out)
    assert out.shape == (B, C, H, W) and out.dtype == jnp.float32

    ref = jax.block_until_ready(_reference(x, w1, w2, alpha))
    np.testing.assert_allclose(np.asarray(out), np.asarray(ref), rtol=2e-3, atol=2e-3)
    print("KERNEL_OK")
</pallas_src>

<mosaic_0001>
module attributes {stable_mosaic.version = 11 : i64} {
  func.func @_residual_block_kernel(%arg0: i32, %arg1: memref<1xf32, #tpu.memory_space<smem>>, %arg2: memref<1x16x128xf32, #tpu.memory_space<vmem>>, %arg3: memref<1152x128xf32, #tpu.memory_space<vmem>>, %arg4: memref<1152x128xf32, #tpu.memory_space<vmem>>, %arg5: memref<1x16x128xf32, #tpu.memory_space<vmem>>) attributes {dimension_semantics = [#tpu.dimension_semantics<parallel>], iteration_bounds = array<i64: 2>, scalar_prefetch = 0 : i64, scratch_operands = 0 : i64, tpu.core_type = #tpu.core_type<tc>, window_params = [{transform_indices = @transform_0, window_bounds = array<i64: 1>}, {transform_indices = @transform_1, window_bounds = array<i64: 1, 16, 128>}, {pipeline_mode = #tpu.pipeline_mode<synchronous>, transform_indices = @transform_2, window_bounds = array<i64: 1152, 128>}, {pipeline_mode = #tpu.pipeline_mode<synchronous>, transform_indices = @transform_3, window_bounds = array<i64: 1152, 128>}, {transform_indices = @transform_4, window_bounds = array<i64: 1, 16, 128>}]} {
    %c0 = arith.constant 0 : index
    %c0_0 = arith.constant 0 : index
    %c0_1 = arith.constant 0 : index
    %0 = vector.load %arg2[%c0, %c0_0, %c0_1] : memref<1x16x128xf32, #tpu.memory_space<vmem>>, vector<1x16x128xf32>
    %1 = vector.shape_cast %0 : vector<1x16x128xf32> to vector<16x128xf32>
    %c0_2 = arith.constant 0 : index
    %2 = memref.load %arg1[%c0_2] : memref<1xf32, #tpu.memory_space<smem>>
    %3 = vector.extract_strided_slice %1 {offsets = [1, 0], sizes = [1, 128], strides = [1, 1]} : vector<16x128xf32> to vector<1x128xf32>
    %4 = vector.extract_strided_slice %1 {offsets = [0, 0], sizes = [15, 128], strides = [1, 1]} : vector<16x128xf32> to vector<15x128xf32>
    %5 = tpu.concatenate %3, %4 in 0 : vector<1x128xf32>, vector<15x128xf32> -> vector<16x128xf32>
    %6 = vector.extract_strided_slice %1 {offsets = [1, 0], sizes = [15, 128], strides = [1, 1]} : vector<16x128xf32> to vector<15x128xf32>
    %7 = vector.extract_strided_slice %1 {offsets = [14, 0], sizes = [1, 128], strides = [1, 1]} : vector<16x128xf32> to vector<1x128xf32>
    %8 = tpu.concatenate %6, %7 in 0 : vector<15x128xf32>, vector<1x128xf32> -> vector<16x128xf32>
    %9 = vector.extract_strided_slice %5 {offsets = [0, 8], sizes = [16, 8], strides = [1, 1]} : vector<16x128xf32> to vector<16x8xf32>
    %10 = vector.extract_strided_slice %5 {offsets = [0, 0], sizes = [16, 120], strides = [1, 1]} : vector<16x128xf32> to vector<16x120xf32>
    %11 = tpu.concatenate %9, %10 in 1 : vector<16x8xf32>, vector<16x120xf32> -> vector<16x128xf32>
    %12 = vector.extract_strided_slice %5 {offsets = [0, 8], sizes = [16, 120], strides = [1, 1]} : vector<16x128xf32> to vector<16x120xf32>
    %13 = vector.extract_strided_slice %5 {offsets = [0, 112], sizes = [16, 8], strides = [1, 1]} : vector<16x128xf32> to vector<16x8xf32>
    %14 = tpu.concatenate %12, %13 in 1 : vector<16x120xf32>, vector<16x8xf32> -> vector<16x128xf32>
    %15 = vector.extract_strided_slice %1 {offsets = [0, 8], sizes = [16, 8], strides = [1, 1]} : vector<16x128xf32> to vector<16x8xf32>
    %16 = vector.extract_strided_slice %1 {offsets = [0, 0], sizes = [16, 120], strides = [1, 1]} : vector<16x128xf32> to vector<16x120xf32>
    %17 = tpu.concatenate %15, %16 in 1 : vector<16x8xf32>, vector<16x120xf32> -> vector<16x128xf32>
    %18 = vector.extract_strided_slice %1 {offsets = [0, 8], sizes = [16, 120], strides = [1, 1]} : vector<16x128xf32> to vector<16x120xf32>
    %19 = vector.extract_strided_slice %1 {offsets = [0, 112], sizes = [16, 8], strides = [1, 1]} : vector<16x128xf32> to vector<16x8xf32>
    %20 = tpu.concatenate %18, %19 in 1 : vector<16x120xf32>, vector<16x8xf32> -> vector<16x128xf32>
    %21 = vector.extract_strided_slice %8 {offsets = [0, 8], sizes = [16, 8], strides = [1, 1]} : vector<16x128xf32> to vector<16x8xf32>
    %22 = vector.extract_strided_slice %8 {offsets = [0, 0], sizes = [16, 120], strides = [1, 1]} : vector<16x128xf32> to vector<16x120xf32>
    %23 = tpu.concatenate %21, %22 in 1 : vector<16x8xf32>, vector<16x120xf32> -> vector<16x128xf32>
    %24 = vector.extract_strided_slice %8 {offsets = [0, 8], sizes = [16, 120], strides = [1, 1]} : vector<16x128xf32> to vector<16x120xf32>
    %25 = vector.extract_strided_slice %8 {offsets = [0, 112], sizes = [16, 8], strides = [1, 1]} : vector<16x128xf32> to vector<16x8xf32>
    %26 = tpu.concatenate %24, %25 in 1 : vector<16x120xf32>, vector<16x8xf32> -> vector<16x128xf32>
    %27 = tpu.concatenate %11, %5, %14, %17, %1, %20, %23, %8, %26 in 1 : vector<16x128xf32>, vector<16x128xf32>, vector<16x128xf32>, vector<16x128xf32>, vector<16x128xf32>, vector<16x128xf32>, vector<16x128xf32>, vector<16x128xf32>, vector<16x128xf32> -> vector<16x1152xf32>
    %c0_3 = arith.constant 0 : index
    %c0_4 = arith.constant 0 : index
    %28 = vector.load %arg3[%c0_3, %c0_4] : memref<1152x128xf32, #tpu.memory_space<vmem>>, vector<1152x128xf32>
    %cst = arith.constant dense<0.000000e+00> : vector<16x128xf32>
    %29 = tpu.matmul %27, %28, %cst {dimension_numbers = #tpu.dot_dimension_numbers<[1], [0], [0], [1], [0, 0, 1, 1], [], []>} : vector<16x1152xf32>, vector<1152x128xf32>, vector<16x128xf32> -> vector<16x128xf32>
    %c8_i32 = arith.constant 8 : i32
    %30 = tpu.dynamic_rotate %29 by %c8_i32 dim 1 : vector<16x128xf32>, i32 -> vector<16x128xf32>
    %31 = arith.addf %29, %30 : vector<16x128xf32>
    %c16_i32 = arith.constant 16 : i32
    %32 = tpu.dynamic_rotate %31 by %c16_i32 dim 1 : vector<16x128xf32>, i32 -> vector<16x128xf32>
    %33 = arith.addf %31, %32 : vector<16x128xf32>
    %c32_i32 = arith.constant 32 : i32
    %34 = tpu.dynamic_rotate %33 by %c32_i32 dim 1 : vector<16x128xf32>, i32 -> vector<16x128xf32>
    %35 = arith.addf %33, %34 : vector<16x128xf32>
    %c64_i32 = arith.constant 64 : i32
    %36 = tpu.dynamic_rotate %35 by %c64_i32 dim 1 : vector<16x128xf32>, i32 -> vector<16x128xf32>
    %37 = arith.addf %35, %36 : vector<16x128xf32>
    %cst_5 = arith.constant dense<0.000000e+00> : vector<128xf32>
    %38 = vector.multi_reduction <add>, %37, %cst_5 [0] : vector<16x128xf32> to vector<128xf32>
    %39 = vector.shape_cast %38 : vector<128xf32> to vector<1x128xf32>
    %cst_6 = arith.constant 3.906250e-03 : f32
    %40 = vector.broadcast %cst_6 : f32 to vector<1x128xf32>
    %41 = arith.mulf %39, %40 : vector<1x128xf32>
    %42 = vector.broadcast %41 : vector<1x128xf32> to vector<16x128xf32>
    %43 = arith.subf %29, %42 : vector<16x128xf32>
    %44 = arith.mulf %43, %43 : vector<16x128xf32>
    %c8_i32_7 = arith.constant 8 : i32
    %45 = tpu.dynamic_rotate %44 by %c8_i32_7 dim 1 : vector<16x128xf32>, i32 -> vector<16x128xf32>
    %46 = arith.addf %44, %45 : vector<16x128xf32>
    %c16_i32_8 = arith.constant 16 : i32
    %47 = tpu.dynamic_rotate %46 by %c16_i32_8 dim 1 : vector<16x128xf32>, i32 -> vector<16x128xf32>
    %48 = arith.addf %46, %47 : vector<16x128xf32>
    %c32_i32_9 = arith.constant 32 : i32
    %49 = tpu.dynamic_rotate %48 by %c32_i32_9 dim 1 : vector<16x128xf32>, i32 -> vector<16x128xf32>
    %50 = arith.addf %48, %49 : vector<16x128xf32>
    %c64_i32_10 = arith.constant 64 : i32
    %51 = tpu.dynamic_rotate %50 by %c64_i32_10 dim 1 : vector<16x128xf32>, i32 -> vector<16x128xf32>
    %52 = arith.addf %50, %51 : vector<16x128xf32>
    %cst_11 = arith.constant dense<0.000000e+00> : vector<128xf32>
    %53 = vector.multi_reduction <add>, %52, %cst_11 [0] : vector<16x128xf32> to vector<128xf32>
    %54 = vector.shape_cast %53 : vector<128xf32> to vector<1x128xf32>
    %cst_12 = arith.constant 3.906250e-03 : f32
    %55 = vector.broadcast %cst_12 : f32 to vector<1x128xf32>
    %56 = arith.mulf %54, %55 : vector<1x128xf32>
    %cst_13 = arith.constant 9.99999974E-6 : f32
    %57 = vector.broadcast %cst_13 : f32 to vector<1x128xf32>
    %58 = arith.addf %56, %57 : vector<1x128xf32>
    %59 = math.rsqrt %58 : vector<1x128xf32>
    %60 = vector.broadcast %59 : vector<1x128xf32> to vector<16x128xf32>
    %61 = arith.mulf %43, %60 : vector<16x128xf32>
    %cst_14 = arith.constant 0.000000e+00 : f32
    %62 = vector.broadcast %cst_14 : f32 to vector<16x128xf32>
    %63 = arith.cmpf oge, %61, %62 : vector<16x128xf32>
    %64 = vector.broadcast %2 : f32 to vector<16x128xf32>
    %65 = arith.mulf %64, %61 : vector<16x128xf32>
    %66 = arith.select %63, %61, %65 : vector<16x128xi1>, vector<16x128xf32>
    %67 = vector.extract_strided_slice %66 {offsets = [1, 0], sizes = [1, 128], strides = [1, 1]} : vector<16x128xf32> to vector<1x128xf32>
    %68 = vector.extract_strided_slice %66 {offsets = [0, 0], sizes = [15, 128], strides = [1, 1]} : vector<16x128xf32> to vector<15x128xf32>
    %69 = tpu.concatenate %67, %68 in 0 : vector<1x128xf32>, vector<15x128xf32> -> vector<16x128xf32>
    %70 = vector.extract_strided_slice %66 {offsets = [1, 0], sizes = [15, 128], strides = [1, 1]} : vector<16x128xf32> to vector<15x128xf32>
    %71 = vector.extract_strided_slice %66 {offsets = [14, 0], sizes = [1, 128], strides = [1, 1]} : vector<16x128xf32> to vector<1x128xf32>
    %72 = tpu.concatenate %70, %71 in 0 : vector<15x128xf32>, vector<1x128xf32> -> vector<16x128xf32>
    %73 = vector.extract_strided_slice %69 {offsets = [0, 8], sizes = [16, 8], strides = [1, 1]} : vector<16x128xf32> to vector<16x8xf32>
    %74 = vector.extract_strided_slice %69 {offsets = [0, 0], sizes = [16, 120], strides = [1, 1]} : vector<16x128xf32> to vector<16x120xf32>
    %75 = tpu.concatenate %73, %74 in 1 : vector<16x8xf32>, vector<16x120xf32> -> vector<16x128xf32>
    %76 = vector.extract_strided_slice %69 {offsets = [0, 8], sizes = [16, 120], strides = [1, 1]} : vector<16x128xf32> to vector<16x120xf32>
    %77 = vector.extract_strided_slice %69 {offsets = [0, 112], sizes = [16, 8], strides = [1, 1]} : vector<16x128xf32> to vector<16x8xf32>
    %78 = tpu.concatenate %76, %77 in 1 : vector<16x120xf32>, vector<16x8xf32> -> vector<16x128xf32>
    %79 = vector.extract_strided_slice %66 {offsets = [0, 8], sizes = [16, 8], strides = [1, 1]} : vector<16x128xf32> to vector<16x8xf32>
    %80 = vector.extract_strided_slice %66 {offsets = [0, 0], sizes = [16, 120], strides = [1, 1]} : vector<16x128xf32> to vector<16x120xf32>
    %81 = tpu.concatenate %79, %80 in 1 : vector<16x8xf32>, vector<16x120xf32> -> vector<16x128xf32>
    %82 = vector.extract_strided_slice %66 {offsets = [0, 8], sizes = [16, 120], strides = [1, 1]} : vector<16x128xf32> to vector<16x120xf32>
    %83 = vector.extract_strided_slice %66 {offsets = [0, 112], sizes = [16, 8], strides = [1, 1]} : vector<16x128xf32> to vector<16x8xf32>
    %84 = tpu.concatenate %82, %83 in 1 : vector<16x120xf32>, vector<16x8xf32> -> vector<16x128xf32>
    %85 = vector.extract_strided_slice %72 {offsets = [0, 8], sizes = [16, 8], strides = [1, 1]} : vector<16x128xf32> to vector<16x8xf32>
    %86 = vector.extract_strided_slice %72 {offsets = [0, 0], sizes = [16, 120], strides = [1, 1]} : vector<16x128xf32> to vector<16x120xf32>
    %87 = tpu.concatenate %85, %86 in 1 : vector<16x8xf32>, vector<16x120xf32> -> vector<16x128xf32>
    %88 = vector.extract_strided_slice %72 {offsets = [0, 8], sizes = [16, 120], strides = [1, 1]} : vector<16x128xf32> to vector<16x120xf32>
    %89 = vector.extract_strided_slice %72 {offsets = [0, 112], sizes = [16, 8], strides = [1, 1]} : vector<16x128xf32> to vector<16x8xf32>
    %90 = tpu.concatenate %88, %89 in 1 : vector<16x120xf32>, vector<16x8xf32> -> vector<16x128xf32>
    %91 = tpu.concatenate %75, %69, %78, %81, %66, %84, %87, %72, %90 in 1 : vector<16x128xf32>, vector<16x128xf32>, vector<16x128xf32>, vector<16x128xf32>, vector<16x128xf32>, vector<16x128xf32>, vector<16x128xf32>, vector<16x128xf32>, vector<16x128xf32> -> vector<16x1152xf32>
    %c0_15 = arith.constant 0 : index
    %c0_16 = arith.constant 0 : index
    %92 = vector.load %arg4[%c0_15, %c0_16] : memref<1152x128xf32, #tpu.memory_space<vmem>>, vector<1152x128xf32>
    %cst_17 = arith.constant dense<0.000000e+00> : vector<16x128xf32>
    %93 = tpu.matmul %91, %92, %cst_17 {dimension_numbers = #tpu.dot_dimension_numbers<[1], [0], [0], [1], [0, 0, 1, 1], [], []>} : vector<16x1152xf32>, vector<1152x128xf32>, vector<16x128xf32> -> vector<16x128xf32>
    %c8_i32_18 = arith.constant 8 : i32
    %94 = tpu.dynamic_rotate %93 by %c8_i32_18 dim 1 : vector<16x128xf32>, i32 -> vector<16x128xf32>
    %95 = arith.addf %93, %94 : vector<16x128xf32>
    %c16_i32_19 = arith.constant 16 : i32
    %96 = tpu.dynamic_rotate %95 by %c16_i32_19 dim 1 : vector<16x128xf32>, i32 -> vector<16x128xf32>
    %97 = arith.addf %95, %96 : vector<16x128xf32>
    %c32_i32_20 = arith.constant 32 : i32
    %98 = tpu.dynamic_rotate %97 by %c32_i32_20 dim 1 : vector<16x128xf32>, i32 -> vector<16x128xf32>
    %99 = arith.addf %97, %98 : vector<16x128xf32>
    %c64_i32_21 = arith.constant 64 : i32
    %100 = tpu.dynamic_rotate %99 by %c64_i32_21 dim 1 : vector<16x128xf32>, i32 -> vector<16x128xf32>
    %101 = arith.addf %99, %100 : vector<16x128xf32>
    %cst_22 = arith.constant dense<0.000000e+00> : vector<128xf32>
    %102 = vector.multi_reduction <add>, %101, %cst_22 [0] : vector<16x128xf32> to vector<128xf32>
    %103 = vector.shape_cast %102 : vector<128xf32> to vector<1x128xf32>
    %cst_23 = arith.constant 3.906250e-03 : f32
    %104 = vector.broadcast %cst_23 : f32 to vector<1x128xf32>
    %105 = arith.mulf %103, %104 : vector<1x128xf32>
    %106 = vector.broadcast %105 : vector<1x128xf32> to vector<16x128xf32>
    %107 = arith.subf %93, %106 : vector<16x128xf32>
    %108 = arith.mulf %107, %107 : vector<16x128xf32>
    %c8_i32_24 = arith.constant 8 : i32
    %109 = tpu.dynamic_rotate %108 by %c8_i32_24 dim 1 : vector<16x128xf32>, i32 -> vector<16x128xf32>
    %110 = arith.addf %108, %109 : vector<16x128xf32>
    %c16_i32_25 = arith.constant 16 : i32
    %111 = tpu.dynamic_rotate %110 by %c16_i32_25 dim 1 : vector<16x128xf32>, i32 -> vector<16x128xf32>
    %112 = arith.addf %110, %111 : vector<16x128xf32>
    %c32_i32_26 = arith.constant 32 : i32
    %113 = tpu.dynamic_rotate %112 by %c32_i32_26 dim 1 : vector<16x128xf32>, i32 -> vector<16x128xf32>
    %114 = arith.addf %112, %113 : vector<16x128xf32>
    %c64_i32_27 = arith.constant 64 : i32
    %115 = tpu.dynamic_rotate %114 by %c64_i32_27 dim 1 : vector<16x128xf32>, i32 -> vector<16x128xf32>
    %116 = arith.addf %114, %115 : vector<16x128xf32>
    %cst_28 = arith.constant dense<0.000000e+00> : vector<128xf32>
    %117 = vector.multi_reduction <add>, %116, %cst_28 [0] : vector<16x128xf32> to vector<128xf32>
    %118 = vector.shape_cast %117 : vector<128xf32> to vector<1x128xf32>
    %cst_29 = arith.constant 3.906250e-03 : f32
    %119 = vector.broadcast %cst_29 : f32 to vector<1x128xf32>
    %120 = arith.mulf %118, %119 : vector<1x128xf32>
    %cst_30 = arith.constant 9.99999974E-6 : f32
    %121 = vector.broadcast %cst_30 : f32 to vector<1x128xf32>
    %122 = arith.addf %120, %121 : vector<1x128xf32>
    %123 = math.rsqrt %122 : vector<1x128xf32>
    %124 = vector.broadcast %123 : vector<1x128xf32> to vector<16x128xf32>
    %125 = arith.mulf %107, %124 : vector<16x128xf32>
    %126 = arith.addf %125, %1 : vector<16x128xf32>
    %cst_31 = arith.constant 0.000000e+00 : f32
    %127 = vector.broadcast %cst_31 : f32 to vector<16x128xf32>
    %128 = arith.cmpf oge, %126, %127 : vector<16x128xf32>
    %129 = vector.broadcast %2 : f32 to vector<16x128xf32>
    %130 = arith.mulf %129, %126 : vector<16x128xf32>
    %131 = arith.select %128, %126, %130 : vector<16x128xi1>, vector<16x128xf32>
    %c0_32 = arith.constant 0 : index
    %c0_33 = arith.constant 0 : index
    %c0_34 = arith.constant 0 : index
    %132 = vector.load %arg5[%c0_32, %c0_33, %c0_34] : memref<1x16x128xf32, #tpu.memory_space<vmem>>, vector<1x16x128xf32>
    %133 = vector.shape_cast %132 : vector<1x16x128xf32> to vector<16x128xf32>
    %134 = vector.shape_cast %131 : vector<16x128xf32> to vector<1x16x128xf32>
    tpu.vector_store %arg5[%c0_32, %c0_33, %c0_34], %134 {strides = array<i32>} : memref<1x16x128xf32, #tpu.memory_space<vmem>>, vector<1x16x128xf32>,
    return
  }
  func.func @transform_0(%arg0: i32) -> i32 {
    %c0_i32 = arith.constant 0 : i32
    %c0_i32_0 = arith.constant 0 : i32
    return %c0_i32 : i32
  }
  func.func @transform_1(%arg0: i32) -> (i32, i32, i32) {
    %c0_i32 = arith.constant 0 : i32
    %c0_i32_0 = arith.constant 0 : i32
    %c0_i32_1 = arith.constant 0 : i32
    return %arg0, %c0_i32, %c0_i32_0 : i32, i32, i32
  }
  func.func @transform_2(%arg0: i32) -> (i32, i32) {
    %c0_i32 = arith.constant 0 : i32
    %c0_i32_0 = arith.constant 0 : i32
    %c0_i32_1 = arith.constant 0 : i32
    return %c0_i32, %c0_i32_0 : i32, i32
  }
  func.func @transform_3(%arg0: i32) -> (i32, i32) {
    %c0_i32 = arith.constant 0 : i32
    %c0_i32_0 = arith.constant 0 : i32
    %c0_i32_1 = arith.constant 0 : i32
    return %c0_i32, %c0_i32_0 : i32, i32
  }
  func.func @transform_4(%arg0: i32) -> (i32, i32, i32) {
    %c0_i32 = arith.constant 0 : i32
    %c0_i32_0 = arith.constant 0 : i32
    %c0_i32_1 = arith.constant 0 : i32
    return %arg0, %c0_i32, %c0_i32_0 : i32, i32, i32
  }
}

</mosaic_0001>

<bundles_post_ra>
// kernel: residual_block.1
= control target key start
LH: loop header
LB: loop body
LE: loop exit
PB: predicated region body
PF: predicated region fallthrough
CT: control target
= control target key end

     0   :  { %s2837_s0 = inlined_call_operand.<no memory space> [shape: f32[1], index: 0, kind: input, shape index: {}]   ;;  %s2838_s1 = inlined_call_operand.vmem [shape: f32[2,16,128], index: 1, kind: input, shape index: {}]   ;;  %s2839_s2 = inlined_call_operand.hbm [shape: f32[1152,128], index: 2, kind: input, shape index: {}]   ;;  %s2840_s3 = inlined_call_operand.hbm [shape: f32[1152,128], index: 3, kind: input, shape index: {}]   ;;  %s2841_s4 = inlined_call_operand.vmem [shape: f32[2,16,128], index: 4, kind: output, shape index: {}]  }
   0x1   :  { %9 = sst [smem:[#allocation2]] %s2837_s0 }
   0x2   :  { %10 = vsyncpa [#allocation4], 0 }
   0x3   :  { %11 = vsyncpa [#allocation6], 0  ;;  %s2542_s17 = smov 0  }
   0x4 LB: > { %s2548_s18 = sadd.s32 4294967295, %s2503_s17   ;;  %p1646_p0 = scmp.ge.s32.totalorder %s2503_s17, 1  ;;  %s2503_s17 = sphi %s2542_s17, %s17_s17  }
   0x5   : > { %p137_p1 = scmp.lt.s32.totalorder %s2503_s17, 3  ;;  %s2505_s19 = smov [#allocation3]  }
   0x6   : > { %s152_s0 = sshll.u32 %s2505_s19, 4  ;;  %p2842_p3 = scmp.eq.s32.totalorder %s2548_s18, 0  ;;  %s153_s0 = int_to_ptr.vmem [resolvable:$true] %s152_s0 }
   0x7   : > { %p2552_p2 = pnand %p1646_p0, %p137_p1  ;;  %s2506_s21 = smov [#allocation5]  }
   0x8   : > { %s165_s22 = sshll.u32 %s2506_s21, 4  ;;  %s2433_s26 = scalar_lea.hbm %s2839_s2, 18432  ;;  %s2565_s22 = int_to_ptr.vmem [resolvable:$true] %s165_s22 }
   0x9   : > { %s2844_s20 = scalar_select %p2552_p2, 1, 0 }
   0xa   : > { %p2399_p4 = pneg %p2552_p2  ;;  %p2434_p6 = scmp.ne.s32.totalorder %s2839_s2, %s2433_s26 }
   0xb   : > { %p2440_p10 = scmp.lt.u32.totalorder %s2433_s26, %s2839_s2 }
   0xc   : > { %p2561_p5 = pnand %p2842_p3, %p2399_p4 }
   0xe   : > { %p2435_p7 = pneg %p2561_p5 }
  0x10   : > { %p2436_p8 = pnand %p2435_p7, %p2434_p6 }
  0x12   : > { %p2437_p9 = pneg %p2436_p8 }
  0x14   : > { %p2442_p11 = pnand %p2440_p10, %p2437_p9 }
  0x16   : > { %2445 = shalt.err (!%p2442_p11)
}
  0x17   : > { %s2446_s5 = scalar_lea.vmem %s153_s0, 18432  ;;  %p2454_p1 = scmp.lt.s32.totalorder %s153_s0, %s153_s0 }
  0x18   : > { %p2447_p12 = scmp.ne.s32.totalorder %s153_s0, %s2446_s5  ;;  %p2455_p4 = scmp.lt.s32.totalorder %s2446_s5, %s2446_s5 }
  0x1a   : > { %p2449_p13 = pnand %p2447_p12, %p2435_p7  ;;  %p2456_p3 = por %p2455_p4, %p2454_p1 }
  0x1c   : > { %p2450_p0 = pneg %p2449_p13 }
  0x1e   : > { %p2457_p2 = pnand %p2456_p3, %p2450_p0 }
  0x20   : > { %2460 = shalt.err (!%p2457_p2)
}
  0x21   : > { %s2507_s6 = smov 128   ;;  %s2508_s7 = smov 8  }
  0x22   : > { %2402 = dma.hbm_to_vmem [thread:$0]  (!%p2561_p5), %s2839_s2, 18432, %s153_s0, [#allocation4], %s2507_s6, %s2507_s6, %s2508_s7  }
  0x23   : > { %s2461_s12 = scalar_lea.hbm %s2840_s3, 18432 }
  0x24   : > { %p2462_p6 = scmp.ne.s32.totalorder %s2840_s3, %s2461_s12  ;;  %p2468_p8 = scmp.lt.u32.totalorder %s2461_s12, %s2840_s3 }
  0x26   : > { %p2464_p2 = pnand %p2462_p6, %p2435_p7 }
  0x28   : > { %p2465_p3 = pneg %p2464_p2 }
  0x2a   : > { %p2470_p9 = pnand %p2468_p8, %p2465_p3 }
  0x2c   : > { %2473 = shalt.err (!%p2470_p9)
}
  0x2d   : > { %s2474_s19 = scalar_lea.vmem %s2565_s22, 18432  ;;  %p2482_p13 = scmp.lt.s32.totalorder %s2565_s22, %s2565_s22 }
  0x2e   : > { %p2475_p10 = scmp.ne.s32.totalorder %s2565_s22, %s2474_s19  ;;  %p2483_p0 = scmp.lt.s32.totalorder %s2474_s19, %s2474_s19 }
  0x30   : > { %p2477_p11 = pnand %p2475_p10, %p2435_p7  ;;  %p2484_p1 = por %p2483_p0, %p2482_p13 }
  0x32   : > { %p2478_p12 = pneg %p2477_p11 }
  0x34   : > { %p2485_p4 = pnand %p2484_p1, %p2478_p12 }
  0x36   : > { %2488 = shalt.err (!%p2485_p4)
}
  0x37   : > { %2405 = dma.hbm_to_vmem [thread:$0]  (!%p2561_p5), %s2840_s3, 18432, %s2565_s22, [#allocation6], %s2507_s6, %s2507_s6, %s2508_s7  }
  0x38   : > { %p2846_p6 = scmp.ne.s32.totalorder %s2844_s20, 0 }
  0x39   : > { %p2847_p2 = scmp.eq.s32.totalorder (!%p2846_p6), %s2548_s18, 0 }
  0x3a   : > { %189 = sbr.rel (%p2846_p6) target bundleno = 2858 (0xb2a), region = 36 }
  0x41   : > { %2494 = dma.done.wait (%p2847_p2), [#allocation4], 18432   ;;  %p2848_p7 = pmov %p2847_p2 }
  0x42   : > { %p2849_p3 = pmov %p2847_p2 }
  0x43   : > { %2496 = vsyncadd (%p2848_p7), [#allocation4], 4294948864 }
  0x44   : > { %2498 = dma.done.wait (%p2849_p3), [#allocation6], 18432   ;;  %p2850_p8 = pmov %p2847_p2 }
  0x45   : > { %p219_p9 = scmp.lt.s32.totalorder %s2548_s18, 1  ;;  %vm236_vm0 = vcmask 1040384   ;;  %v318_v2 = vld [vmem:[#allocation3 + $0x80] sm:$0xff]  ;;  %s2509_s25 = smov 120   ;;  %v319_v5 = vld [vmem:[#allocation3 + $0x88] sm:$0xff]  ;;  %v320_v15 = vld [vmem:[#allocation3 + $0x90] sm:$0xff] }
  0x46   : > { %2500 = vsyncadd (%p2850_p8), [#allocation6], 4294948864  ;;  %v302_v6 = vld [vmem:[#allocation3] sm:$0xff]  ;;  %v2071_v8 = vpack.c.bf16 %v319_v5, %v318_v2  ;;  %v303_v9 = vld [vmem:[#allocation3 + $0x8] sm:$0xff]  ;;  %s2510_s26 = smov 8   ;;  %vm243_vm1 = vcmask 1046528  }
  0x47   : > { %s2852_s18 = smov (!%p219_p9, %s2548_s18), 1  ;;  %v350_v10 = vld [vmem:[#allocation3 + $0x180] sm:$0xff]  ;;  %v351_v11 = vld [vmem:[#allocation3 + $0x188] sm:$0xff]  ;;  %v2073_v16 = vpack.c.bf16 %v303_v9, %v302_v6  ;;  %v321_v19 = vld [vmem:[#allocation3 + $0x98] sm:$0xff]  ;;  %vm263_vm2 = vcmask 64512   ;;  %vm266_vm3 = vcmask 982016  }
  0x48   : > { %s1659_s20 = sshll.u32 %s2852_s18, 4  ;;  %v334_v13 = vld [vmem:[#allocation3 + $0x100] sm:$0xff]  ;;  %v335_v14 = vld [vmem:[#allocation3 + $0x108] sm:$0xff]  ;;  %2072 = vmatprep.subr.bf16.mxu0 %v2071_v8  ;;  %v2103_v17 = vpack.c.bf16 %v351_v11, %v350_v10  ;;  %v304_v20 = vld [vmem:[#allocation3 + $0x10] sm:$0xff]  ;;  %v2075_v22 = vpack.c.bf16 %v321_v19, %v320_v15  ;;  %s2511_s27 = smov 16  }
  0x49   : > { %s2634_s24 = scalar_lea.vmem %s2838_s1, %s1659_s20  ;;  %v2105_v18 = vpack.c.bf16 %v335_v14, %v334_v13  ;;  %v305_v21 = vld [vmem:[#allocation3 + $0x18] sm:$0xff]  ;;  %v352_v23 = vld [vmem:[#allocation3 + $0x190] sm:$0xff]  ;;  %2074 = vmatpush3.bf16.msra.mxu0 %v2073_v16  ;;  %v322_v30 = vld [vmem:[#allocation3 + $0xa0] sm:$0xff]  ;;  %s2512_s28 = smov 32  }
  0x4a   : > { %v2637_v0 = vld [vmem:[%s2634_s24] sm:$0xff]  ;;  %v2640_v1 = vld [vmem:[%s2634_s24 + $0x8] sm:$0xff]  ;;  %v353_v24 = vld [vmem:[#allocation3 + $0x198] sm:$0xff]  ;;  %2104 = vmatprep.subr.bf16.mxu1 %v2103_v17  ;;  %v2077_v27 = vpack.c.bf16 %v305_v21, %v304_v20  ;;  %2076 = vmatprep.subr.bf16.mxu0 %v2075_v22  ;;  %s2513_s29 = smov 64   ;;  %s231_s30 = sld [smem:[#allocation2]] }
  0x4b   : > { %269 = vrot.lane.b32.xlu1 %v2637_v0, %s2509_s25  ;;  %v233_v3 = vrot.slane %v2637_v0, 1  ;;  %v237_v4 = vrot.slane %v2637_v0, 7  ;;  %v238_v7 = vrot.slane %v2640_v1, 7  ;;  %v336_v25 = vld [vmem:[#allocation3 + $0x110] sm:$0xff]  ;;  %v2107_v28 = vpack.c.bf16 %v353_v24, %v352_v23  ;;  %v337_v29 = vld [vmem:[#allocation3 + $0x118] sm:$0xff]  ;;  %v323_v31 = vld [vmem:[#allocation3 + $0xa8] sm:$0xff]  ;;  %2106 = vmatpush3.bf16.msra.mxu1 %v2105_v18  ;;  %s228_s7 = scalar_lea.vmem %s2841_s4, %s1659_s20 }
  0x4c   : > { %v2109_v32 = vpack.c.bf16 %v337_v29, %v336_v25  ;;  %v2079_v33 = vpack.c.bf16 %v323_v31, %v322_v30  ;;  %v306_v34 = vld [vmem:[#allocation3 + $0x20] sm:$0xff]  ;;  %v307_v35 = vld [vmem:[#allocation3 + $0x28] sm:$0xff]  ;;  %v324_v41 = vld [vmem:[#allocation3 + $0xb0] sm:$0xff]  ;;  %v244_v43 = vrot.slane %v2640_v1, 1 }
  0x4d   : > { %v242_v12 = vsel %vm236_vm0, %v233_v3, %v237_v4  ;;  %v2656_v26 = vsel %vm236_vm0, %v237_v4, %v238_v7  ;;  %v354_v36 = vld [vmem:[#allocation3 + $0x1a0] sm:$0xff]  ;;  %2108 = vmatprep.subr.bf16.mxu1 %v2107_v28  ;;  %v355_v37 = vld [vmem:[#allocation3 + $0x1a8] sm:$0xff]  ;;  %v325_v42 = vld [vmem:[#allocation3 + $0xb8] sm:$0xff]  ;;  %2078 = vmatpush3.bf16.msra.mxu0 %v2077_v27  ;;  %v2081_v44 = vpack.c.bf16 %v307_v35, %v306_v34 }
  0x4e   : > { %251 = vrot.lane.b32.xlu0 %v242_v12, %s2509_s25  ;;  %510 = vmatprep.mubr.f32.mxu0 %v242_v12  ;;  %v338_v38 = vld [vmem:[#allocation3 + $0x120] sm:$0xff]  ;;  %v339_v39 = vld [vmem:[#allocation3 + $0x128] sm:$0xff]  ;;  %v2111_v40 = vpack.c.bf16 %v355_v37, %v354_v36  ;;  %v356_v45 = vld [vmem:[#allocation3 + $0x1b0] sm:$0xff]  ;;  %v2083_v48 = vpack.c.bf16 %v325_v42, %v324_v41  ;;  %v2669_v58 = vsel %vm243_vm1, %v233_v3, %v244_v43 }
  0x4f   : > { %275 = vrot.lane.b32.xlu1 %v2637_v0, %s2510_s26  ;;  %v357_v46 = vld [vmem:[#allocation3 + $0x1b8] sm:$0xff]  ;;  %2110 = vmatpush3.bf16.msra.mxu1 %v2109_v32  ;;  %v2113_v47 = vpack.c.bf16 %v339_v39, %v338_v38  ;;  %v308_v49 = vld [vmem:[#allocation3 + $0x30] sm:$0xff]  ;;  %v326_v54 = vld [vmem:[#allocation3 + $0xc0] sm:$0xff]  ;;  %v2678_v10 = vsel %vm243_vm1, %v244_v43, %v238_v7 }
  0x50   : > { %2080 = vmatprep.subr.bf16.mxu0 %v2079_v33  ;;  %v309_v50 = vld [vmem:[#allocation3 + $0x38] sm:$0xff]  ;;  %v340_v51 = vld [vmem:[#allocation3 + $0x130] sm:$0xff]  ;;  %2112 = vmatprep.subr.bf16.mxu1 %v2111_v40  ;;  %v2115_v52 = vpack.c.bf16 %v357_v46, %v356_v45  ;;  %v327_v55 = vld [vmem:[#allocation3 + $0xc8] sm:$0xff] }
  0x51   : > { %v341_v53 = vld [vmem:[#allocation3 + $0x138] sm:$0xff]  ;;  %v358_v56 = vld [vmem:[#allocation3 + $0x1c0] sm:$0xff]  ;;  %v359_v57 = vld [vmem:[#allocation3 + $0x1c8] sm:$0xff]  ;;  %2082 = vmatpush3.bf16.msra.mxu0 %v2081_v44  ;;  %v2085_v59 = vpack.c.bf16 %v309_v50, %v308_v49  ;;  %v2087_v61 = vpack.c.bf16 %v327_v55, %v326_v54 }
  0x52   : > { %257 = vrot.lane.b32.xlu0 %v242_v12, %s2510_s26  ;;  %2084 = vmatprep.subr.bf16.mxu0 %v2083_v48  ;;  %v2117_v60 = vpack.c.bf16 %v341_v53, %v340_v51  ;;  %v310_v62 = vld [vmem:[#allocation3 + $0x40] sm:$0xff]  ;;  %v311_v63 = vld [vmem:[#allocation3 + $0x48] sm:$0xff]  ;;  %v2119_v4 = vpack.c.bf16 %v359_v57, %v358_v56  ;;  %v328_v6 = vld [vmem:[#allocation3 + $0xd0] sm:$0xff] }
  0x53   : > { %259 = vrot.lane.b32.xlu1 %v2656_v26, %s2510_s26  ;;  %2114 = vmatpush3.bf16.msra.mxu1 %v2113_v47  ;;  %v342_v2 = vld [vmem:[#allocation3 + $0x140] sm:$0xff]  ;;  %v343_v5 = vld [vmem:[#allocation3 + $0x148] sm:$0xff]  ;;  %v329_v8 = vld [vmem:[#allocation3 + $0xd8] sm:$0xff]  ;;  %v2089_v11 = vpack.c.bf16 %v311_v63, %v310_v62 }
  0x54   : > { %2116 = vmatprep.subr.bf16.mxu1 %v2115_v52  ;;  %v360_v3 = vld [vmem:[#allocation3 + $0x1d0] sm:$0xff]  ;;  %v361_v9 = vld [vmem:[#allocation3 + $0x1d8] sm:$0xff]  ;;  %v2121_v12 = vpack.c.bf16 %v343_v5, %v342_v2  ;;  %v2091_v13 = vpack.c.bf16 %v329_v8, %v328_v6  ;;  %v330_v19 = vld [vmem:[#allocation3 + $0xe0] sm:$0xff] }
  0x55   : > { %2086 = vmatpush3.bf16.msra.mxu0 %v2085_v59  ;;  %v312_v14 = vld [vmem:[#allocation3 + $0x50] sm:$0xff]  ;;  %v313_v15 = vld [vmem:[#allocation3 + $0x58] sm:$0xff]  ;;  %v2123_v17 = vpack.c.bf16 %v361_v9, %v360_v3  ;;  %v331_v20 = vld [vmem:[#allocation3 + $0xe8] sm:$0xff] }
  0x56   : > { %253 = vrot.lane.b32.xlu0 %v2656_v26, %s2509_s25  ;;  %2088 = vmatprep.subr.bf16.mxu0 %v2087_v61  ;;  %v344_v16 = vld [vmem:[#allocation3 + $0x150] sm:$0xff]  ;;  %v345_v18 = vld [vmem:[#allocation3 + $0x158] sm:$0xff]  ;;  %v362_v7 = vld [vmem:[#allocation3 + $0x1e0] sm:$0xff]  ;;  %v2093_v22 = vpack.c.bf16 %v313_v15, %v312_v14  ;;  %v2095_v24 = vpack.c.bf16 %v331_v20, %v330_v19 }
  0x57   : > { %277 = vrot.lane.b32.xlu1 %v2640_v1, %s2510_s26  ;;  %2118 = vmatpush3.bf16.msra.mxu1 %v2117_v60  ;;  %v363_v21 = vld [vmem:[#allocation3 + $0x1e8] sm:$0xff]  ;;  %v2125_v23 = vpack.c.bf16 %v345_v18, %v344_v16  ;;  %v314_v25 = vld [vmem:[#allocation3 + $0x60] sm:$0xff]  ;;  %v332_v31 = vld [vmem:[#allocation3 + $0xf0] sm:$0xff] }
  0x58   : > { %2120 = vmatprep.subr.bf16.mxu1 %v2119_v4  ;;  %v315_v27 = vld [vmem:[#allocation3 + $0x68] sm:$0xff]  ;;  %v346_v28 = vld [vmem:[#allocation3 + $0x160] sm:$0xff]  ;;  %v2127_v29 = vpack.c.bf16 %v363_v21, %v362_v7  ;;  %v333_v32 = vld [vmem:[#allocation3 + $0xf8] sm:$0xff] }
  0x59   : > { %2090 = vmatpush3.bf16.msra.mxu0 %v2089_v11  ;;  %v347_v30 = vld [vmem:[#allocation3 + $0x168] sm:$0xff]  ;;  %v364_v33 = vld [vmem:[#allocation3 + $0x1f0] sm:$0xff]  ;;  %v365_v34 = vld [vmem:[#allocation3 + $0x1f8] sm:$0xff]  ;;  %v2097_v35 = vpack.c.bf16 %v315_v27, %v314_v25  ;;  %v2099_v37 = vpack.c.bf16 %v333_v32, %v332_v31 }
  0x5a   : > { %271 = vrot.lane.b32.xlu0 %v2640_v1, %s2509_s25  ;;  %2092 = vmatprep.subr.bf16.mxu0 %v2091_v13  ;;  %v2129_v36 = vpack.c.bf16 %v347_v30, %v346_v28  ;;  %v316_v38 = vld [vmem:[#allocation3 + $0x70] sm:$0xff]  ;;  %v317_v39 = vld [vmem:[#allocation3 + $0x78] sm:$0xff]  ;;  %v2131_v41 = vpack.c.bf16 %v365_v34, %v364_v33  ;;  %v382_v43 = vld [vmem:[#allocation3 + $0x280] sm:$0xff] }
  0x5b   : > { %292 = vrot.lane.b32.xlu1 %v2669_v58, %s2510_s26  ;;  %2122 = vmatpush3.bf16.msra.mxu1 %v2121_v12  ;;  %v348_v40 = vld [vmem:[#allocation3 + $0x170] sm:$0xff]  ;;  %v349_v42 = vld [vmem:[#allocation3 + $0x178] sm:$0xff]  ;;  %v383_v44 = vld [vmem:[#allocation3 + $0x288] sm:$0xff]  ;;  %v2101_v47 = vpack.c.bf16 %v317_v39, %v316_v38 }
  0x5c   : > { %2124 = vmatprep.subr.bf16.mxu1 %v2123_v17  ;;  %v414_v45 = vld [vmem:[#allocation3 + $0x380] sm:$0xff]  ;;  %v415_v46 = vld [vmem:[#allocation3 + $0x388] sm:$0xff]  ;;  %v2133_v48 = vpack.c.bf16 %v349_v42, %v348_v40  ;;  %v2135_v49 = vpack.c.bf16 %v383_v44, %v382_v43  ;;  %v384_v57 = vld [vmem:[#allocation3 + $0x290] sm:$0xff] }
  0x5d   : > { %2094 = vmatpush3.bf16.msra.mxu0 %v2093_v22  ;;  %v2167_v50 = vpack.c.bf16 %v415_v46, %v414_v45  ;;  %v366_v52 = vld [vmem:[#allocation3 + $0x200] sm:$0xff]  ;;  %v367_v53 = vld [vmem:[#allocation3 + $0x208] sm:$0xff]  ;;  %v385_v60 = vld [vmem:[#allocation3 + $0x298] sm:$0xff] }
  0x5e   : > { %286 = vrot.lane.b32.xlu0 %v2669_v58, %s2509_s25  ;;  %2096 = vmatprep.subr.bf16.mxu0 %v2095_v24  ;;  %v398_v55 = vld [vmem:[#allocation3 + $0x300] sm:$0xff]  ;;  %v399_v56 = vld [vmem:[#allocation3 + $0x308] sm:$0xff]  ;;  %v416_v61 = vld [vmem:[#allocation3 + $0x390] sm:$0xff]  ;;  %v2137_v2 = vpack.c.bf16 %v367_v53, %v366_v52  ;;  %v2139_v3 = vpack.c.bf16 %v385_v60, %v384_v57 }
  0x5f   : > { %294 = vrot.lane.b32.xlu1 %v2678_v10, %s2510_s26  ;;  %2126 = vmatpush3.bf16.msra.mxu1 %v2125_v23  ;;  %v417_v62 = vld [vmem:[#allocation3 + $0x398] sm:$0xff]  ;;  %v2169_v4 = vpack.c.bf16 %v399_v56, %v398_v55  ;;  %v368_v5 = vld [vmem:[#allocation3 + $0x210] sm:$0xff]  ;;  %v386_v13 = vld [vmem:[#allocation3 + $0x2a0] sm:$0xff] }
  0x60   : > { %2128 = vmatprep.subr.bf16.mxu1 %v2127_v29  ;;  %v369_v6 = vld [vmem:[#allocation3 + $0x218] sm:$0xff]  ;;  %v2171_v9 = vpack.c.bf16 %v417_v62, %v416_v61  ;;  %v400_v11 = vld [vmem:[#allocation3 + $0x310] sm:$0xff]  ;;  %v387_v16 = vld [vmem:[#allocation3 + $0x2a8] sm:$0xff] }
  0x61   : > { %2098 = vmatpush3.bf16.msra.mxu0 %v2097_v35  ;;  %v401_v12 = vld [vmem:[#allocation3 + $0x318] sm:$0xff]  ;;  %v418_v17 = vld [vmem:[#allocation3 + $0x3a0] sm:$0xff]  ;;  %v419_v18 = vld [vmem:[#allocation3 + $0x3a8] sm:$0xff]  ;;  %v2141_v20 = vpack.c.bf16 %v369_v6, %v368_v5  ;;  %v2143_v23 = vpack.c.bf16 %v387_v16, %v386_v13 }
  0x62   : > { %288 = vrot.lane.b32.xlu0 %v2678_v10, %s2509_s25  ;;  %2100 = vmatprep.subr.bf16.mxu0 %v2099_v37  ;;  %v2173_v7 = vpack.c.bf16 %v401_v12, %v400_v11  ;;  %v370_v21 = vld [vmem:[#allocation3 + $0x220] sm:$0xff]  ;;  %v371_v22 = vld [vmem:[#allocation3 + $0x228] sm:$0xff]  ;;  %v2175_v24 = vpack.c.bf16 %v419_v18, %v418_v17  ;;  %v388_v28 = vld [vmem:[#allocation3 + $0x2b0] sm:$0xff] }
  0x63   : > { %2130 = vmatpush3.bf16.msra.mxu1 %v2129_v36  ;;  %v402_v25 = vld [vmem:[#allocation3 + $0x320] sm:$0xff]  ;;  %v403_v27 = vld [vmem:[#allocation3 + $0x328] sm:$0xff]  ;;  %v389_v30 = vld [vmem:[#allocation3 + $0x2b8] sm:$0xff]  ;;  %v2145_v36 = vpack.c.bf16 %v371_v22, %v370_v21 }
  0x64   : > { %2132 = vmatprep.subr.bf16.mxu1 %v2131_v41  ;;  %v420_v31 = vld [vmem:[#allocation3 + $0x3b0] sm:$0xff]  ;;  %v421_v32 = vld [vmem:[#allocation3 + $0x3b8] sm:$0xff]  ;;  %v2177_v37 = vpack.c.bf16 %v403_v27, %v402_v25  ;;  %v2147_v40 = vpack.c.bf16 %v389_v30, %v388_v28  ;;  %v391_v45 = vld [vmem:[#allocation3 + $0x2c8] sm:$0xff] }
  0x65   : > { %2102 = vmatpush3.bf16.msra.mxu0 %v2101_v47  ;;  %v372_v38 = vld [vmem:[#allocation3 + $0x230] sm:$0xff]  ;;  %v373_v39 = vld [vmem:[#allocation3 + $0x238] sm:$0xff]  ;;  %v2179_v41 = vpack.c.bf16 %v421_v32, %v420_v31  ;;  %v422_v46 = vld [vmem:[#allocation3 + $0x3c0] sm:$0xff] }
  0x66   : > { %2136 = vmatprep.subr.bf16.mxu0 %v2135_v49  ;;  %v404_v42 = vld [vmem:[#allocation3 + $0x330] sm:$0xff]  ;;  %v405_v43 = vld [vmem:[#allocation3 + $0x338] sm:$0xff]  ;;  %v423_v47 = vld [vmem:[#allocation3 + $0x3c8] sm:$0xff] }
  0x67   : > { %2134 = vmatpush3.bf16.msra.mxu1 %v2133_v48  ;;  %v374_v52 = vld [vmem:[#allocation3 + $0x240] sm:$0xff]  ;;  %v375_v53 = vld [vmem:[#allocation3 + $0x248] sm:$0xff]  ;;  %v2183_v55 = vpack.c.bf16 %v423_v47, %v422_v46  ;;  %v393_v60 = vld [vmem:[#allocation3 + $0x2d8] sm:$0xff] }
  0x68   : > { %2168 = vmatprep.subr.bf16.mxu1 %v2167_v50  ;;  %v2149_v50 = vpack.c.bf16 %v373_v39, %v372_v38  ;;  %v406_v56 = vld [vmem:[#allocation3 + $0x340] sm:$0xff]  ;;  %v407_v57 = vld [vmem:[#allocation3 + $0x348] sm:$0xff]  ;;  %v424_v61 = vld [vmem:[#allocation3 + $0x3d0] sm:$0xff] }
  0x69   : > { %v425_v62 = vld [vmem:[#allocation3 + $0x3d8] sm:$0xff]  ;;  %v394_v11 = vld [vmem:[#allocation3 + $0x2e0] sm:$0xff]  ;;  %v395_v12 = vld [vmem:[#allocation3 + $0x2e8] sm:$0xff] }
  0x6a   : > { %v377_v5 = vld [vmem:[#allocation3 + $0x258] sm:$0xff]  ;;  %v426_v13 = vld [vmem:[#allocation3 + $0x3e0] sm:$0xff]  ;;  %v379_v17 = vld [vmem:[#allocation3 + $0x268] sm:$0xff]  ;;  %v2159_v18 = vpack.c.bf16 %v395_v12, %v394_v11 }
  0x6b   : > { %v378_v16 = vld [vmem:[#allocation3 + $0x260] sm:$0xff]  ;;  %v396_v21 = vld [vmem:[#allocation3 + $0x2f0] sm:$0xff]  ;;  %v397_v22 = vld [vmem:[#allocation3 + $0x2f8] sm:$0xff] }
  0x6c   : > { %v2161_v25 = vpack.c.bf16 %v379_v17, %v378_v16  ;;  %v380_v28 = vld [vmem:[#allocation3 + $0x270] sm:$0xff]  ;;  %v381_v30 = vld [vmem:[#allocation3 + $0x278] sm:$0xff] }
  0x6d   : > { %v412_v32 = vld [vmem:[#allocation3 + $0x370] sm:$0xff]  ;;  %v2165_v39 = vpack.c.bf16 %v381_v30, %v380_v28 }
  0xbd   : > { %v270_v51 = vpop.permute.xlu1 %269 }
  0xc0   : > { %v252_v54 = vpop.permute.xlu0 %251 }
  0xc1   : > { %v276_v59 = vpop.permute.xlu1 %275 }
  0xc2   : > { %v281_v63 = vsel %vm263_vm2, %v270_v51, %v276_v59  ;;  %v283_v34 = vsel %vm266_vm3, %v270_v51, %v276_v59  ;;  %v2181_v51 = vpack.c.bf16 %v405_v43, %v404_v42  ;;  %v392_v59 = vld [vmem:[#allocation3 + $0x2d0] sm:$0xff]  ;;  %v433_v43 = vld [vmem:[#allocation3 + $0x418] sm:$0xff] }
  0xc3   : > { %585 = vmatprep.mubr.f32.mxu1 %v281_v63  ;;  %v2153_v63 = vpack.c.bf16 %v375_v53, %v374_v52  ;;  %v2155_v6 = vpack.c.bf16 %v393_v60, %v392_v59  ;;  %v432_v42 = vld [vmem:[#allocation3 + $0x410] sm:$0xff]  ;;  %v441_v59 = vld [vmem:[#allocation3 + $0x458] sm:$0xff]  ;;  %v442_v60 = vld [vmem:[#allocation3 + $0x460] sm:$0xff] }
  0xc4   : > { %v258_v8 = vpop.permute.xlu0 %257 }
  0xc5   : > { %v264_v14 = vsel %vm263_vm2, %v252_v54, %v258_v8  ;;  %v267_v15 = vsel %vm266_vm3, %v252_v54, %v258_v8  ;;  %v260_v19 = vpop.permute.xlu1 %259  ;;  %v2187_v8 = vpack.c.bf16 %v425_v62, %v424_v61  ;;  %v443_v61 = vld [vmem:[#allocation3 + $0x468] sm:$0xff]  ;;  %v444_v62 = vld [vmem:[#allocation3 + $0x470] sm:$0xff] }
  0xc6   : > { %511 = vmatmul.mubr.f32.vlgmr.msra.gmra.mrb[0].mxu0 %v264_v14  ;;  %586 = vmatmul.mubr.f32.vlgmr.msra.gmra.mrb[0].mxu1 %v267_v15  ;;  %v427_v14 = vld [vmem:[#allocation3 + $0x3e8] sm:$0xff] }
  0xc7   : > { %2138 = vmatpush3.bf16.msra.mxu0 %v2137_v2  ;;  %2170 = vmatpush3.bf16.msra.mxu1 %v2169_v4  ;;  %v2185_v2 = vpack.c.bf16 %v407_v57, %v406_v56  ;;  %v376_v4 = vld [vmem:[#allocation3 + $0x250] sm:$0xff] }
  0xc8   : > { %2140 = vmatprep.subr.bf16.mxu0 %v2139_v3  ;;  %2172 = vmatprep.subr.bf16.mxu1 %v2171_v9  ;;  %v254_v29 = vpop.permute.xlu0 %253  ;;  %v408_v3 = vld [vmem:[#allocation3 + $0x350] sm:$0xff]  ;;  %v409_v9 = vld [vmem:[#allocation3 + $0x358] sm:$0xff]  ;;  %v2157_v15 = vpack.c.bf16 %v377_v5, %v376_v4 }
  0xc9   : > { %515 = vmatprep.mubr.f32.mxu0 %v2656_v26  ;;  %v265_v33 = vsel %vm263_vm2, %v254_v29, %v260_v19  ;;  %v2692_v35 = vpop.permute.xlu1 %277  ;;  %v390_v26 = vld [vmem:[#allocation3 + $0x2c0] sm:$0xff]  ;;  %v268_v49 = vsel %vm266_vm3, %v254_v29, %v260_v19  ;;  %v2191_v19 = vpack.c.bf16 %v427_v14, %v426_v13  ;;  %v2163_v29 = vpack.c.bf16 %v397_v22, %v396_v21  ;;  %v440_v57 = vld [vmem:[#allocation3 + $0x450] sm:$0xff] }
  0xca   : > { %516 = vmatmul.mubr.f32.gmra.mrb[2].mxu0 %v265_v33  ;;  %v2151_v54 = vpack.c.bf16 %v391_v45, %v390_v26  ;;  %v413_v33 = vld [vmem:[#allocation3 + $0x378] sm:$0xff] }
  0xcb   : > { %2142 = vmatpush3.bf16.msra.mxu0 %v2141_v20  ;;  %2174 = vmatpush3.bf16.msra.mxu1 %v2173_v7  ;;  %v410_v20 = vld [vmem:[#allocation3 + $0x360] sm:$0xff]  ;;  %v411_v7 = vld [vmem:[#allocation3 + $0x368] sm:$0xff] }
  0xcc   : > { %2144 = vmatprep.subr.bf16.mxu0 %v2143_v23  ;;  %2176 = vmatprep.subr.bf16.mxu1 %v2175_v24  ;;  %v2694_v44 = vpop.permute.xlu0 %271  ;;  %v428_v23 = vld [vmem:[#allocation3 + $0x3f0] sm:$0xff]  ;;  %v429_v24 = vld [vmem:[#allocation3 + $0x3f8] sm:$0xff]  ;;  %v2193_v27 = vpack.c.bf16 %v411_v7, %v410_v20 }
  0xcd   : > { %660 = vmatprep.mubr.f32.mxu0 %v283_v34  ;;  %v282_v48 = vsel %vm263_vm2, %v2694_v44, %v2692_v35  ;;  %v2195_v31 = vpack.c.bf16 %v429_v24, %v428_v23  ;;  %v430_v34 = vld [vmem:[#allocation3 + $0x400] sm:$0xff]  ;;  %v284_v45 = vsel %vm266_vm3, %v2694_v44, %v2692_v35  ;;  %v437_v35 = vld [vmem:[#allocation3 + $0x438] sm:$0xff] }
  0xce   : > { %590 = vmatprep.mubr.f32.mxu1 %v282_v48  ;;  %v2203_v48 = vpack.c.bf16 %v433_v43, %v432_v42  ;;  %v438_v44 = vld [vmem:[#allocation3 + $0x440] sm:$0xff] }
  0xcf   : > { %2146 = vmatpush3.bf16.msra.mxu0 %v2145_v36  ;;  %2178 = vmatpush3.bf16.msra.mxu1 %v2177_v37  ;;  %v431_v36 = vld [vmem:[#allocation3 + $0x408] sm:$0xff]  ;;  %v293_v37 = vpop.permute.xlu1 %292 }
  0xd0   : > { %2148 = vmatprep.subr.bf16.mxu0 %v2147_v40  ;;  %2180 = vmatprep.subr.bf16.mxu1 %v2179_v41  ;;  %v287_v38 = vpop.permute.xlu0 %286  ;;  %v2197_v40 = vpack.c.bf16 %v413_v33, %v412_v32  ;;  %v2199_v41 = vpack.c.bf16 %v431_v36, %v430_v34 }
  0xd1   : > { %591 = vmatmul.mubr.f32.gmra.mrb[2].mxu1 %v268_v49  ;;  %v298_v26 = vsel %vm263_vm2, %v287_v38, %v293_v37  ;;  %v434_v49 = vld [vmem:[#allocation3 + $0x420] sm:$0xff]  ;;  %v300_v53 = vsel %vm266_vm3, %v287_v38, %v293_v37 }
  0xd2   : > { %735 = vmatprep.mubr.f32.mxu1 %v2669_v58  ;;  %v2189_v58 = vpack.c.bf16 %v409_v9, %v408_v3 }
  0xd3   : > { %2150 = vmatpush3.bf16.msra.mxu0 %v2149_v50  ;;  %2182 = vmatpush3.bf16.msra.mxu1 %v2181_v51  ;;  %v295_v46 = vpop.permute.xlu1 %294  ;;  %v435_v50 = vld [vmem:[#allocation3 + $0x428] sm:$0xff] }
  0xd4   : > { %2152 = vmatprep.subr.bf16.mxu0 %v2151_v54  ;;  %2184 = vmatprep.subr.bf16.mxu1 %v2183_v55  ;;  %v289_v47 = vpop.permute.xlu0 %288  ;;  %v2207_v52 = vpack.c.bf16 %v435_v50, %v434_v49  ;;  %v436_v54 = vld [vmem:[#allocation3 + $0x430] sm:$0xff]  ;;  %v439_v55 = vld [vmem:[#allocation3 + $0x448] sm:$0xff] }
  0xd5   : > { %v299_v51 = vsel %vm263_vm2, %v289_v47, %v295_v46  ;;  %v2215_v56 = vpack.c.bf16 %v439_v55, %v438_v44  ;;  %v301_v4 = vsel %vm266_vm3, %v289_v47, %v295_v46 }
  0xd7   : > { %2154 = vmatpush3.bf16.msra.mxu0 %v2153_v63  ;;  %2186 = vmatpush3.bf16.msra.mxu1 %v2185_v2  ;;  %v445_v63 = vld [vmem:[#allocation3 + $0x478] sm:$0xff] }
  0xd8   : > { %2156 = vmatprep.subr.bf16.mxu0 %v2155_v6  ;;  %2188 = vmatprep.subr.bf16.mxu1 %v2187_v8  ;;  %v2227_v2 = vpack.c.bf16 %v445_v63, %v444_v62 }
  0xdb   : > { %2158 = vmatpush3.bf16.msra.mxu0 %v2157_v15  ;;  %2190 = vmatpush3.bf16.msra.mxu1 %v2189_v58 }
  0xdc   : > { %2160 = vmatprep.subr.bf16.mxu0 %v2159_v18  ;;  %2192 = vmatprep.subr.bf16.mxu1 %v2191_v19 }
  0xdf   : > { %2162 = vmatpush3.bf16.msra.mxu0 %v2161_v25  ;;  %2194 = vmatpush3.bf16.msra.mxu1 %v2193_v27 }
  0xe0   : > { %2164 = vmatprep.subr.bf16.mxu0 %v2163_v29  ;;  %2196 = vmatprep.subr.bf16.mxu1 %v2195_v31 }
  0xe3   : > { %2166 = vmatpush3.bf16.msra.mxu0 %v2165_v39  ;;  %2198 = vmatpush3.bf16.msra.mxu1 %v2197_v40 }
  0xe4   : > { %2200 = vmatprep.subr.bf16.mxu0 %v2199_v41 }
  0xe6   : > { %661 = vmatmul.mubr.f32.vlgmr.msra.gmra.mrb[4].mxu0 %v2637_v0  ;;  %736 = vmatmul.mubr.f32.vlgmr.msra.gmra.mrb[4].mxu1 %v298_v26  ;;  %v2211_v0 = vpack.c.bf16 %v437_v35, %v436_v54 }
  0xe7   : > { %2202 = vmatpush3.bf16.msra.mxu0 %v2199_v41  ;;  %665 = vmatprep.mubr.f32.mxu0 %v284_v45 }
  0xe8   : > { %2204 = vmatprep.subr.bf16.mxu0 %v2203_v48  ;;  %740 = vmatprep.mubr.f32.mxu1 %v2678_v10  ;;  %v2219_v10 = vpack.c.bf16 %v441_v59, %v440_v57 }
  0xea   : > { %666 = vmatmul.mubr.f32.gmra.mrb[6].mxu0 %v2640_v1  ;;  %741 = vmatmul.mubr.f32.gmra.mrb[6].mxu1 %v299_v51  ;;  %v2223_v1 = vpack.c.bf16 %v443_v61, %v442_v60 }
  0xeb   : > { %2206 = vmatpush3.bf16.msra.mxu0 %v2203_v48  ;;  %2033 = vmatprep.mubr.f32.mxu0 %v300_v53 }
  0xec   : > { %2208 = vmatprep.subr.bf16.mxu0 %v2207_v52 }
  0xef   : > { %2210 = vmatpush3.bf16.msra.mxu0 %v2207_v52 }
  0xf0   : > { %2212 = vmatprep.subr.bf16.mxu0 %v2211_v0 }
  0xf3   : > { %2214 = vmatpush3.bf16.msra.mxu0 %v2211_v0 }
  0xf4   : > { %2216 = vmatprep.subr.bf16.mxu0 %v2215_v56 }
  0xf7   : > { %2218 = vmatpush3.bf16.msra.mxu0 %v2215_v56 }
  0xf8   : > { %2220 = vmatprep.subr.bf16.mxu0 %v2219_v10 }
  0xfb   : > { %2222 = vmatpush3.bf16.msra.mxu0 %v2219_v10 }
  0xfc   : > { %2224 = vmatprep.subr.bf16.mxu0 %v2223_v1 }
  0xff   : > { %2226 = vmatpush3.bf16.msra.mxu0 %v2223_v1 }
 0x100   : > { %2228 = vmatprep.subr.bf16.mxu0 %v2227_v2 }
 0x103   : > { %2230 = vmatpush3.bf16.msra.mxu0 %v2227_v2 }
 0x106   : > { %2034 = vmatmul.mubr.f32.vlgmr.msra.gmra.mrb[8].mxu0 %v301_v4 }
 0x199   : > { %v1693_v5 = vpop.f32.mrb[0].mxu0  ;;  %v1731_v6 = vpop.f32.mrb[0].mxu1 }
 0x19a   : > { %v1694_v8 = vpop.f32.mrb[1].mxu0  ;;  %v1732_v3 = vpop.f32.mrb[1].mxu1 }
 0x19b   : > { %v1695_v9 = vadd.f32 %v1694_v8, %v1693_v5  ;;  %v1733_v11 = vadd.f32 %v1732_v3, %v1731_v6 }
 0x19d   : > { %v588_v12 = vadd.f32 %v1733_v11, %v1695_v9  ;;  %v1696_v13 = vpop.f32.mrb[2].mxu0 }
 0x19e   : > { %v1697_v14 = vpop.f32.mrb[3].mxu0 }
 0x19f   : > { %v1698_v15 = vadd.f32 %v1697_v14, %v1696_v13 }
 0x1a4   : > { %v1734_v58 = vpop.f32.mrb[2].mxu1 }
 0x1a5   : > { %v1735_v16 = vpop.f32.mrb[3].mxu1 }
 0x1a6   : > { %v1736_v17 = vadd.f32 %v1735_v16, %v1734_v58  ;;  %v982_v58 = vld [vmem:[#allocation5 + $0x80] sm:$0xff]  ;;  %v983_v16 = vld [vmem:[#allocation5 + $0x88] sm:$0xff] }
 0x1a8   : > { %v593_v18 = vadd.f32 %v1736_v17, %v1698_v15  ;;  %v966_v17 = vld [vmem:[#allocation5] sm:$0xff] }
 0x1b9   : > { %v1769_v19 = vpop.f32.mrb[4].mxu0  ;;  %v1807_v20 = vpop.f32.mrb[4].mxu1 }
 0x1ba   : > { %v1770_v7 = vpop.f32.mrb[5].mxu0  ;;  %v1808_v21 = vpop.f32.mrb[5].mxu1 }
 0x1bb   : > { %v1771_v22 = vadd.f32 %v1770_v7, %v1769_v19  ;;  %v1809_v23 = vadd.f32 %v1808_v21, %v1807_v20  ;;  %v967_v19 = vld [vmem:[#allocation5 + $0x8] sm:$0xff]  ;;  %v984_v20 = vld [vmem:[#allocation5 + $0x90] sm:$0xff]  ;;  %v985_v7 = vld [vmem:[#allocation5 + $0x98] sm:$0xff] }
 0x1bc   : > { %v2233_v21 = vpack.c.bf16 %v967_v19, %v966_v17  ;;  %v1024_v19 = vld [vmem:[#allocation5 + $0x1d0] sm:$0xff] }
 0x1bd   : > { %v663_v24 = vadd.f32 %v1771_v22, %v588_v12  ;;  %v1772_v25 = vpop.f32.mrb[6].mxu0  ;;  %v1810_v27 = vpop.f32.mrb[6].mxu1  ;;  %v2235_v22 = vpack.c.bf16 %v985_v7, %v984_v20  ;;  %v1025_v20 = vld [vmem:[#allocation5 + $0x1d8] sm:$0xff]  ;;  %v994_v7 = vld [vmem:[#allocation5 + $0xe0] sm:$0xff] }
 0x1be   : > { %v1773_v28 = vpop.f32.mrb[7].mxu0  ;;  %v1811_v29 = vpop.f32.mrb[7].mxu1 }
 0x1bf   : > { %v1774_v30 = vadd.f32 %v1773_v28, %v1772_v25  ;;  %v1812_v31 = vadd.f32 %v1811_v29, %v1810_v27  ;;  %v738_v32 = vadd.f32 %v1809_v23, %v663_v24  ;;  %v968_v23 = vld [vmem:[#allocation5 + $0x10] sm:$0xff]  ;;  %v969_v24 = vld [vmem:[#allocation5 + $0x18] sm:$0xff]  ;;  %v1014_v25 = vld [vmem:[#allocation5 + $0x180] sm:$0xff] }
 0x1c0   : > { %v1015_v27 = vld [vmem:[#allocation5 + $0x188] sm:$0xff]  ;;  %v998_v28 = vld [vmem:[#allocation5 + $0x100] sm:$0xff] }
 0x1c1   : > { %v668_v33 = vadd.f32 %v1774_v30, %v593_v18  ;;  %v2231_v18 = vpack.c.bf16 %v983_v16, %v982_v58  ;;  %v999_v29 = vld [vmem:[#allocation5 + $0x108] sm:$0xff]  ;;  %v2237_v30 = vpack.c.bf16 %v969_v24, %v968_v23  ;;  %v1006_v58 = vld [vmem:[#allocation5 + $0x140] sm:$0xff] }
 0x1c2   : > { %v1007_v16 = vld [vmem:[#allocation5 + $0x148] sm:$0xff]  ;;  %v978_v24 = vld [vmem:[#allocation5 + $0x60] sm:$0xff] }
 0x1c3   : > { %v743_v34 = vadd.f32 %v1812_v31, %v668_v33  ;;  %2232 = vmatprep.subr.bf16.mxu1 %v2231_v18  ;;  %v2263_v31 = vpack.c.bf16 %v1015_v27, %v1014_v25  ;;  %v986_v33 = vld [vmem:[#allocation5 + $0xa0] sm:$0xff]  ;;  %v977_v18 = vld [vmem:[#allocation5 + $0x58] sm:$0xff]  ;;  %v2283_v25 = vpack.c.bf16 %v1025_v20, %v1024_v19  ;;  %v1008_v27 = vld [vmem:[#allocation5 + $0x150] sm:$0xff] }
 0x1c4   : > { %2234 = vmatpush3.bf16.msra.mxu1 %v2233_v21  ;;  %v995_v21 = vld [vmem:[#allocation5 + $0xe8] sm:$0xff] }
 0x1c5   : > { %2236 = vmatprep.subr.bf16.mxu1 %v2235_v22  ;;  %2264 = vmatprep.subr.bf16.mxu0 %v2263_v31  ;;  %v2281_v22 = vpack.c.bf16 %v1007_v16, %v1006_v58  ;;  %v1026_v31 = vld [vmem:[#allocation5 + $0x1e0] sm:$0xff] }
 0x1c8   : > { %2238 = vmatpush3.bf16.msra.mxu1 %v2237_v30  ;;  %v979_v30 = vld [vmem:[#allocation5 + $0x68] sm:$0xff] }
 0x1d9   : > { %v2035_v36 = vpop.f32.mrb[8].mxu0 }
 0x1da   : > { %v818_v37 = vadd.f32 %v2035_v36, %v743_v34  ;;  %v812_v38 = vpop.f32.mrb[9].mxu0  ;;  %v987_v34 = vld [vmem:[#allocation5 + $0xa8] sm:$0xff]  ;;  %v970_v36 = vld [vmem:[#allocation5 + $0x20] sm:$0xff] }
 0x1db   : > { %v813_v39 = vadd.f32 %v812_v38, %v738_v32  ;;  %v2265_v32 = vpack.c.bf16 %v999_v29, %v998_v28  ;;  %v971_v38 = vld [vmem:[#allocation5 + $0x28] sm:$0xff]  ;;  %v1009_v28 = vld [vmem:[#allocation5 + $0x158] sm:$0xff]  ;;  %v2255_v29 = vpack.c.bf16 %v995_v21, %v994_v7  ;;  %v1030_v21 = vld [vmem:[#allocation5 + $0x200] sm:$0xff] }
 0x1dc   : > { %823 = vrot.lane.b32.xlu1 %v818_v37, %s2510_s26 }
 0x1dd   : > { %821 = vrot.lane.b32.xlu0 %v813_v39, %s2510_s26  ;;  %2266 = vmatpush3.bf16.msra.mxu0 %v2265_v32  ;;  %v1027_v32 = vld [vmem:[#allocation5 + $0x1e8] sm:$0xff] }
 0x24e   : > { %v824_v40 = vpop.permute.xlu1 %823 }
 0x24f   : > { %v826_v41 = vadd.f32 %v824_v40, %v818_v37  ;;  %v822_v42 = vpop.permute.xlu0 %821  ;;  %v1017_v40 = vld [vmem:[#allocation5 + $0x198] sm:$0xff] }
 0x250   : > { %v825_v43 = vadd.f32 %v822_v42, %v813_v39  ;;  %v1000_v42 = vld [vmem:[#allocation5 + $0x110] sm:$0xff] }
 0x251   : > { %829 = vrot.lane.b32.xlu1 %v826_v41, %s2511_s27 }
 0x252   : > { %827 = vrot.lane.b32.xlu0 %v825_v43, %s2511_s27 }
 0x2c3   : > { %v830_v26 = vpop.permute.xlu1 %829 }
 0x2c4   : > { %v832_v45 = vadd.f32 %v830_v26, %v826_v41  ;;  %v828_v46 = vpop.permute.xlu0 %827  ;;  %v988_v26 = vld [vmem:[#allocation5 + $0xb0] sm:$0xff] }
 0x2c5   : > { %v831_v47 = vadd.f32 %v828_v46, %v825_v43  ;;  %v1001_v43 = vld [vmem:[#allocation5 + $0x118] sm:$0xff] }
 0x2c6   : > { %835 = vrot.lane.b32.xlu1 %v832_v45, %s2512_s28  ;;  %v989_v46 = vld [vmem:[#allocation5 + $0xb8] sm:$0xff] }
 0x2c7   : > { %833 = vrot.lane.b32.xlu0 %v831_v47, %s2512_s28 }
 0x338   : > { %v836_v48 = vpop.permute.xlu1 %835 }
 0x339   : > { %v838_v49 = vadd.f32 %v836_v48, %v832_v45  ;;  %v834_v50 = vpop.permute.xlu0 %833  ;;  %v2269_v45 = vpack.c.bf16 %v1001_v43, %v1000_v42  ;;  %v1018_v48 = vld [vmem:[#allocation5 + $0x1a0] sm:$0xff]  ;;  %v980_v42 = vld [vmem:[#allocation5 + $0x70] sm:$0xff]  ;;  %v981_v43 = vld [vmem:[#allocation5 + $0x78] sm:$0xff] }
 0x33a   : > { %v837_v51 = vadd.f32 %v834_v50, %v831_v47  ;;  %v2241_v47 = vpack.c.bf16 %v971_v38, %v970_v36  ;;  %v1002_v50 = vld [vmem:[#allocation5 + $0x120] sm:$0xff]  ;;  %v2285_v36 = vpack.c.bf16 %v1009_v28, %v1008_v27  ;;  %v2287_v38 = vpack.c.bf16 %v1027_v32, %v1026_v31  ;;  %v1033_v31 = vld [vmem:[#allocation5 + $0x218] sm:$0xff] }
 0x33b   : > { %841 = vrot.lane.b32.xlu1 %v838_v49, %s2513_s29  ;;  %v1062_v32 = vld [vmem:[#allocation5 + $0x300] sm:$0xff] }
 0x33c   : > { %839 = vrot.lane.b32.xlu0 %v837_v51, %s2513_s29 }
 0x3ad   : > { %v842_v52 = vpop.permute.xlu1 %841 }
 0x3ae   : > { %v844_v53 = vadd.f32 %v842_v52, %v838_v49  ;;  %v840_v54 = vpop.permute.xlu0 %839  ;;  %v1019_v49 = vld [vmem:[#allocation5 + $0x1a8] sm:$0xff]  ;;  %v972_v52 = vld [vmem:[#allocation5 + $0x30] sm:$0xff] }
 0x3af   : > { %v843_v35 = vadd.f32 %v840_v54, %v837_v51  ;;  %v2243_v51 = vpack.c.bf16 %v989_v46, %v988_v26  ;;  %v2271_v54 = vpack.c.bf16 %v1019_v49, %v1018_v48 }
 0x3b1   : > { %v845_v0 = vadd.f32 %v844_v53, %v843_v35  ;;  %v973_v53 = vld [vmem:[#allocation5 + $0x38] sm:$0xff]  ;;  %v1003_v35 = vld [vmem:[#allocation5 + $0x128] sm:$0xff] }
 0x3b3   : > { %v846_v44 = vrot.slane %v845_v0, 4 }
 0x3b5   : > { %v847_v55 = vadd.f32 %v846_v44, %v845_v0  ;;  %v990_v0 = vld [vmem:[#allocation5 + $0xc0] sm:$0xff]  ;;  %v991_v44 = vld [vmem:[#allocation5 + $0xc8] sm:$0xff] }
 0x3b7   : > { %v848_v56 = vrot.slane %v847_v55, 2 }
 0x3b9   : > { %v849_v57 = vadd.f32 %v848_v56, %v847_v55  ;;  %v1020_v55 = vld [vmem:[#allocation5 + $0x1b0] sm:$0xff]  ;;  %v2273_v56 = vpack.c.bf16 %v1003_v35, %v1002_v50 }
 0x3bb   : > { %v850_v59 = vrot.slane %v849_v57, 1 }
 0x3bd   : > { %v851_v10 = vadd.f32 %v850_v59, %v849_v57  ;;  %v1021_v57 = vld [vmem:[#allocation5 + $0x1b8] sm:$0xff]  ;;  %v2245_v59 = vpack.c.bf16 %v973_v53, %v972_v52 }
 0x3bf   : > { %v852_v60 = vmul.f32 0.00390625, %v851_v10  ;;  %v974_v10 = vld [vmem:[#allocation5 + $0x40] sm:$0xff] }
 0x3c1   : > { %v2719_v61 = vsub.f32 %v818_v37, %v852_v60  ;;  %v2721_v1 = vsub.f32 %v813_v39, %v852_v60  ;;  %v2239_v37 = vpack.c.bf16 %v987_v34, %v986_v33  ;;  %v1016_v39 = vld [vmem:[#allocation5 + $0x190] sm:$0xff]  ;;  %v2275_v60 = vpack.c.bf16 %v1021_v57, %v1020_v55  ;;  %v997_v34 = vld [vmem:[#allocation5 + $0xf8] sm:$0xff]  ;;  %v1047_v57 = vld [vmem:[#allocation5 + $0x288] sm:$0xff] }
 0x3c2   : > { %v2267_v41 = vpack.c.bf16 %v1017_v40, %v1016_v39  ;;  %v996_v33 = vld [vmem:[#allocation5 + $0xf0] sm:$0xff]  ;;  %v1010_v39 = vld [vmem:[#allocation5 + $0x160] sm:$0xff]  ;;  %v1011_v40 = vld [vmem:[#allocation5 + $0x168] sm:$0xff] }
 0x3c3   : > { %v856_v62 = vmul.f32 %v2719_v61, %v2719_v61  ;;  %v855_v63 = vmul.f32 %v2721_v1, %v2721_v1  ;;  %2240 = vmatprep.subr.bf16.mxu1 %v2239_v37  ;;  %v2257_v37 = vpack.c.bf16 %v979_v30, %v978_v24  ;;  %v2289_v26 = vpack.c.bf16 %v1011_v40, %v1010_v39  ;;  %v1049_v24 = vld [vmem:[#allocation5 + $0x298] sm:$0xff]  ;;  %v1032_v30 = vld [vmem:[#allocation5 + $0x210] sm:$0xff] }
 0x3c4   : > { %2268 = vmatprep.subr.bf16.mxu0 %v2267_v41  ;;  %2242 = vmatpush3.bf16.msra.mxu1 %v2241_v47  ;;  %v2259_v41 = vpack.c.bf16 %v997_v34, %v996_v33  ;;  %v1063_v34 = vld [vmem:[#allocation5 + $0x308] sm:$0xff]  ;;  %v1081_v39 = vld [vmem:[#allocation5 + $0x398] sm:$0xff]  ;;  %v2301_v40 = vpack.c.bf16 %v1033_v31, %v1032_v30  ;;  %v1040_v31 = vld [vmem:[#allocation5 + $0x250] sm:$0xff] }
 0x3c5   : > { %859 = vrot.lane.b32.xlu1 %v856_v62, %s2510_s26  ;;  %857 = vrot.lane.b32.xlu0 %v855_v63, %s2510_s26 }
 0x3c6   : > { %2270 = vmatpush3.bf16.msra.mxu0 %v2269_v45  ;;  %2244 = vmatprep.subr.bf16.mxu1 %v2243_v51  ;;  %v2261_v45 = vpack.c.bf16 %v981_v43, %v980_v42  ;;  %v2329_v43 = vpack.c.bf16 %v1063_v34, %v1062_v32  ;;  %v1041_v32 = vld [vmem:[#allocation5 + $0x258] sm:$0xff] }
 0x3c7   : > { %2272 = vmatprep.subr.bf16.mxu0 %v2271_v54 }
 0x3c8   : > { %2246 = vmatpush3.bf16.msra.mxu1 %v2245_v59 }
 0x3ca   : > { %2274 = vmatpush3.bf16.msra.mxu0 %v2273_v56  ;;  %v1046_v56 = vld [vmem:[#allocation5 + $0x280] sm:$0xff] }
 0x3cb   : > { %2276 = vmatprep.subr.bf16.mxu0 %v2275_v60  ;;  %v2295_v59 = vpack.c.bf16 %v1047_v57, %v1046_v56  ;;  %v1029_v60 = vld [vmem:[#allocation5 + $0x1f8] sm:$0xff] }
 0x437   : > { %v860_v2 = vpop.permute.xlu1 %859  ;;  %v858_v4 = vpop.permute.xlu0 %857 }
 0x438   : > { %v862_v5 = vadd.f32 %v860_v2, %v856_v62  ;;  %v861_v6 = vadd.f32 %v858_v4, %v855_v63  ;;  %v1004_v62 = vld [vmem:[#allocation5 + $0x130] sm:$0xff]  ;;  %v1005_v63 = vld [vmem:[#allocation5 + $0x138] sm:$0xff]  ;;  %v2247_v2 = vpack.c.bf16 %v991_v44, %v990_v0  ;;  %v975_v4 = vld [vmem:[#allocation5 + $0x48] sm:$0xff] }
 0x43a   : > { %865 = vrot.lane.b32.xlu1 %v862_v5, %s2511_s27  ;;  %863 = vrot.lane.b32.xlu0 %v861_v6, %s2511_s27 }
 0x43b   : > { %2248 = vmatprep.subr.bf16.mxu1 %v2247_v2  ;;  %v1078_v2 = vld [vmem:[#allocation5 + $0x380] sm:$0xff] }
 0x4ac   : > { %v866_v8 = vpop.permute.xlu1 %865  ;;  %v864_v3 = vpop.permute.xlu0 %863 }
 0x4ad   : > { %v868_v9 = vadd.f32 %v866_v8, %v862_v5  ;;  %v867_v11 = vadd.f32 %v864_v3, %v861_v6  ;;  %v1022_v5 = vld [vmem:[#allocation5 + $0x1c0] sm:$0xff]  ;;  %v1023_v6 = vld [vmem:[#allocation5 + $0x1c8] sm:$0xff]  ;;  %v992_v8 = vld [vmem:[#allocation5 + $0xd0] sm:$0xff] }
 0x4ae   : > { %v993_v3 = vld [vmem:[#allocation5 + $0xd8] sm:$0xff] }
 0x4af   : > { %871 = vrot.lane.b32.xlu1 %v868_v9, %s2512_s28  ;;  %869 = vrot.lane.b32.xlu0 %v867_v11, %s2512_s28  ;;  %v2251_v17 = vpack.c.bf16 %v993_v3, %v992_v8 }
 0x521   : > { %v872_v12 = vpop.permute.xlu1 %871  ;;  %v870_v13 = vpop.permute.xlu0 %869 }
 0x522   : > { %v2733_v14 = vadd.f32 %v872_v12, %v868_v9  ;;  %v2735_v15 = vadd.f32 %v870_v13, %v867_v11  ;;  %v2277_v9 = vpack.c.bf16 %v1005_v63, %v1004_v62  ;;  %v2249_v11 = vpack.c.bf16 %v975_v4, %v974_v10  ;;  %v976_v12 = vld [vmem:[#allocation5 + $0x50] sm:$0xff]  ;;  %v1013_v63 = vld [vmem:[#allocation5 + $0x178] sm:$0xff] }
 0x523   : > { %v2279_v13 = vpack.c.bf16 %v1023_v6, %v1022_v5  ;;  %v2253_v23 = vpack.c.bf16 %v977_v18, %v976_v12  ;;  %v1028_v10 = vld [vmem:[#allocation5 + $0x1f0] sm:$0xff]  ;;  %v2743_v5 = vstv %s231_s30  ;;  %v1079_v6 = vld [vmem:[#allocation5 + $0x388] sm:$0xff] }
 0x524   : > { %877 = vrot.lane.b32.xlu1 %v2733_v14, %s2513_s29  ;;  %875 = vrot.lane.b32.xlu0 %v2735_v15, %s2513_s29  ;;  %v2291_v62 = vpack.c.bf16 %v1029_v60, %v1028_v10  ;;  %v1037_v10 = vld [vmem:[#allocation5 + $0x238] sm:$0xff] }
 0x525   : > { %2278 = vmatpush3.bf16.msra.mxu0 %v2277_v9  ;;  %2250 = vmatpush3.bf16.msra.mxu1 %v2249_v11  ;;  %v2327_v9 = vpack.c.bf16 %v1079_v6, %v1078_v2  ;;  %v1084_v6 = vld [vmem:[#allocation5 + $0x3b0] sm:$0xff] }
 0x526   : > { %2280 = vmatprep.subr.bf16.mxu0 %v2279_v13  ;;  %2252 = vmatprep.subr.bf16.mxu1 %v2251_v17 }
 0x529   : > { %2282 = vmatpush3.bf16.msra.mxu0 %v2281_v22  ;;  %2254 = vmatpush3.bf16.msra.mxu1 %v2253_v23  ;;  %v1031_v22 = vld [vmem:[#allocation5 + $0x208] sm:$0xff]  ;;  %v1048_v23 = vld [vmem:[#allocation5 + $0x290] sm:$0xff] }
 0x52a   : > { %2284 = vmatprep.subr.bf16.mxu0 %v2283_v25  ;;  %2256 = vmatprep.subr.bf16.mxu1 %v2255_v29  ;;  %v2297_v25 = vpack.c.bf16 %v1031_v22, %v1030_v21  ;;  %v2299_v29 = vpack.c.bf16 %v1049_v24, %v1048_v23  ;;  %v1069_v21 = vld [vmem:[#allocation5 + $0x338] sm:$0xff]  ;;  %v1056_v22 = vld [vmem:[#allocation5 + $0x2d0] sm:$0xff] }
 0x52b   : > { %v1057_v23 = vld [vmem:[#allocation5 + $0x2d8] sm:$0xff] }
 0x52c   : > { %v2315_v30 = vpack.c.bf16 %v1057_v23, %v1056_v22  ;;  %v1101_v22 = vld [vmem:[#allocation5 + $0x438] sm:$0xff] }
 0x52d   : > { %2286 = vmatpush3.bf16.msra.mxu0 %v2285_v36  ;;  %2258 = vmatpush3.bf16.msra.mxu1 %v2257_v37  ;;  %v1050_v36 = vld [vmem:[#allocation5 + $0x2a0] sm:$0xff]  ;;  %v1051_v37 = vld [vmem:[#allocation5 + $0x2a8] sm:$0xff] }
 0x52e   : > { %2288 = vmatprep.subr.bf16.mxu0 %v2287_v38  ;;  %2260 = vmatprep.subr.bf16.mxu1 %v2259_v41  ;;  %v1080_v38 = vld [vmem:[#allocation5 + $0x390] sm:$0xff] }
 0x531   : > { %2290 = vmatpush3.bf16.msra.mxu0 %v2289_v26  ;;  %2262 = vmatpush3.bf16.msra.mxu1 %v2261_v45  ;;  %v2303_v26 = vpack.c.bf16 %v1051_v37, %v1050_v36  ;;  %v1034_v45 = vld [vmem:[#allocation5 + $0x220] sm:$0xff]  ;;  %v1071_v36 = vld [vmem:[#allocation5 + $0x348] sm:$0xff] }
 0x532   : > { %2296 = vmatprep.subr.bf16.mxu1 %v2295_v59  ;;  %2292 = vmatprep.subr.bf16.mxu0 %v2291_v62  ;;  %v1036_v59 = vld [vmem:[#allocation5 + $0x230] sm:$0xff]  ;;  %v1058_v37 = vld [vmem:[#allocation5 + $0x2e0] sm:$0xff] }
 0x596   : > { %v878_v46 = vpop.permute.xlu1 %877  ;;  %v876_v47 = vpop.permute.xlu0 %875 }
 0x597   : > { %v880_v48 = vadd.f32 %v878_v46, %v2733_v14  ;;  %v879_v49 = vadd.f32 %v876_v47, %v2735_v15  ;;  %v1012_v14 = vld [vmem:[#allocation5 + $0x170] sm:$0xff]  ;;  %v1035_v46 = vld [vmem:[#allocation5 + $0x228] sm:$0xff] }
 0x598   : > { %v2293_v15 = vpack.c.bf16 %v1013_v63, %v1012_v14  ;;  %v1064_v47 = vld [vmem:[#allocation5 + $0x310] sm:$0xff]  ;;  %v1066_v14 = vld [vmem:[#allocation5 + $0x320] sm:$0xff]  ;;  %v1067_v63 = vld [vmem:[#allocation5 + $0x328] sm:$0xff] }
 0x599   : > { %v881_v50 = vadd.f32 %v880_v48, %v879_v49  ;;  %v2331_v49 = vpack.c.bf16 %v1081_v39, %v1080_v38  ;;  %v1059_v38 = vld [vmem:[#allocation5 + $0x2e8] sm:$0xff]  ;;  %v1088_v39 = vld [vmem:[#allocation5 + $0x3d0] sm:$0xff] }
 0x59a   : > { %2294 = vmatpush3.bf16.msra.mxu0 %v2293_v15  ;;  %v1054_v15 = vld [vmem:[#allocation5 + $0x2c0] sm:$0xff] }
 0x59b   : > { %v882_v51 = vrot.slane %v881_v50, 4  ;;  %2328 = vmatprep.subr.bf16.mxu0 %v2327_v9 }
 0x59d   : > { %v883_v52 = vadd.f32 %v882_v51, %v881_v50  ;;  %v1065_v50 = vld [vmem:[#allocation5 + $0x318] sm:$0xff]  ;;  %v1052_v51 = vld [vmem:[#allocation5 + $0x2b0] sm:$0xff] }
 0x59e   : > { %v2333_v56 = vpack.c.bf16 %v1065_v50, %v1064_v47  ;;  %v1073_v47 = vld [vmem:[#allocation5 + $0x358] sm:$0xff]  ;;  %v1090_v50 = vld [vmem:[#allocation5 + $0x3e0] sm:$0xff] }
 0x59f   : > { %v884_v53 = vrot.slane %v883_v52, 2 }
 0x5a1   : > { %v885_v54 = vadd.f32 %v884_v53, %v883_v52  ;;  %v1053_v52 = vld [vmem:[#allocation5 + $0x2b8] sm:$0xff] }
 0x5a2   : > { %v2307_v57 = vpack.c.bf16 %v1053_v52, %v1052_v51  ;;  %v1091_v51 = vld [vmem:[#allocation5 + $0x3e8] sm:$0xff] }
 0x5a3   : > { %v886_v35 = vrot.slane %v885_v54, 1 }
 0x5a5   : > { %v887_v0 = vadd.f32 %v886_v35, %v885_v54  ;;  %v1082_v54 = vld [vmem:[#allocation5 + $0x3a0] sm:$0xff]  ;;  %v1083_v35 = vld [vmem:[#allocation5 + $0x3a8] sm:$0xff] }
 0x5a6   : > { %v2335_v62 = vpack.c.bf16 %v1083_v35, %v1082_v54  ;;  %v1044_v35 = vld [vmem:[#allocation5 + $0x270] sm:$0xff] }
 0x5a7   : > { %v888_v44 = vmul.f32 0.00390625, %v887_v0  ;;  %v2305_v0 = vpack.c.bf16 %v1035_v46, %v1034_v45  ;;  %v1072_v45 = vld [vmem:[#allocation5 + $0x350] sm:$0xff] }
 0x5a9   : > { %v889_v55 = vadd.f32 1e-05, %v888_v44 }
 0x5ab   : > { %2427 = vrsqrt.f32 %v889_v55 }
 0x5b5   : > { %v2428_v4 = vpop.eup %2427 }
 0x5b6   : > { %v891_v8 = vmul.f32 %v2428_v4, %v2721_v1  ;;  %v892_v3 = vmul.f32 %v2428_v4, %v2719_v61  ;;  %v1055_v4 = vld [vmem:[#allocation5 + $0x2c8] sm:$0xff] }
 0x5b8   : > { %vm893_vm4 = vcmp.ge.f32.partialorder %v891_v8, 0.0  ;;  %v896_v11 = vmul.f32 %v2743_v5, %v891_v8  ;;  %v897_v13 = vmul.f32 %v2743_v5, %v892_v3  ;;  %vm894_vm5 = vcmp.ge.f32.partialorder %v892_v3, 0.0 }
 0x5ba   : > { %v2748_v12 = vsel %vm893_vm4, %v891_v8, %v896_v11  ;;  %v2756_v61 = vsel %vm894_vm5, %v892_v3, %v897_v13  ;;  %v1085_v8 = vld [vmem:[#allocation5 + $0x3b8] sm:$0xff]  ;;  %v2309_v3 = vpack.c.bf16 %v1037_v10, %v1036_v59  ;;  %v2337_v13 = vpack.c.bf16 %v1067_v63, %v1066_v14  ;;  %v1095_v59 = vld [vmem:[#allocation5 + $0x408] sm:$0xff]  ;;  %v1092_v10 = vld [vmem:[#allocation5 + $0x3f0] sm:$0xff] }
 0x5bb   : > { %v901_v58 = vrot.slane %v2748_v12, 1  ;;  %v904_v16 = vrot.slane %v2748_v12, 7  ;;  %v905_v1 = vrot.slane %v2756_v61, 7  ;;  %v910_v19 = vrot.slane %v2756_v61, 1 }
 0x5bd   : > { %v909_v17 = vsel %vm236_vm0, %v901_v58, %v904_v16  ;;  %v906_v18 = vsel %vm236_vm0, %v904_v16, %v905_v1  ;;  %v2772_v20 = vsel %vm243_vm1, %v901_v58, %v910_v19  ;;  %v2779_v7 = vsel %vm243_vm1, %v910_v19, %v905_v1  ;;  %v1038_v58 = vld [vmem:[#allocation5 + $0x240] sm:$0xff]  ;;  %v1039_v16 = vld [vmem:[#allocation5 + $0x248] sm:$0xff] }
 0x5be   : > { %923 = vrot.lane.b32.xlu1 %v909_v17, %s2510_s26  ;;  %917 = vrot.lane.b32.xlu0 %v909_v17, %s2509_s25  ;;  %v2339_v19 = vpack.c.bf16 %v1085_v8, %v1084_v6  ;;  %v1096_v6 = vld [vmem:[#allocation5 + $0x410] sm:$0xff]  ;;  %v1097_v8 = vld [vmem:[#allocation5 + $0x418] sm:$0xff] }
 0x5bf   : > { %1174 = vmatprep.mubr.f32.mxu1 %v909_v17  ;;  %v1068_v17 = vld [vmem:[#allocation5 + $0x330] sm:$0xff] }
 0x5c2   : > { %939 = vrot.lane.b32.xlu1 %v2748_v12, %s2510_s26  ;;  %933 = vrot.lane.b32.xlu0 %v2748_v12, %s2509_s25 }
 0x5c6   : > { %925 = vrot.lane.b32.xlu1 %v906_v18, %s2510_s26  ;;  %919 = vrot.lane.b32.xlu0 %v906_v18, %s2509_s25 }
 0x5ca   : > { %941 = vrot.lane.b32.xlu1 %v2756_v61, %s2510_s26  ;;  %935 = vrot.lane.b32.xlu0 %v2756_v61, %s2509_s25 }
 0x5ce   : > { %956 = vrot.lane.b32.xlu1 %v2772_v20, %s2510_s26  ;;  %950 = vrot.lane.b32.xlu0 %v2772_v20, %s2509_s25 }
 0x5d2   : > { %958 = vrot.lane.b32.xlu1 %v2779_v7, %s2510_s26  ;;  %952 = vrot.lane.b32.xlu0 %v2779_v7, %s2509_s25 }
 0x630   : > { %v924_v27 = vpop.permute.xlu1 %923  ;;  %v918_v28 = vpop.permute.xlu0 %917 }
 0x631   : > { %v929_v33 = vsel %vm263_vm2, %v918_v28, %v924_v27  ;;  %v931_v53 = vsel %vm266_vm3, %v918_v28, %v924_v27  ;;  %v1087_v27 = vld [vmem:[#allocation5 + $0x3c8] sm:$0xff]  ;;  %v2313_v28 = vpack.c.bf16 %v1039_v16, %v1038_v58 }
 0x632   : > { %1175 = vmatmul.mubr.f32.vlgmr.msra.gmra.mrb[8].mxu1 %v929_v33  ;;  %v1070_v33 = vld [vmem:[#allocation5 + $0x340] sm:$0xff] }
 0x633   : > { %2298 = vmatpush3.bf16.msra.mxu1 %v2297_v25  ;;  %1179 = vmatprep.mubr.f32.mxu1 %v906_v18  ;;  %v2311_v18 = vpack.c.bf16 %v1055_v4, %v1054_v15  ;;  %v1086_v25 = vld [vmem:[#allocation5 + $0x3c0] sm:$0xff]  ;;  %v1076_v15 = vld [vmem:[#allocation5 + $0x370] sm:$0xff]  ;;  %v1077_v4 = vld [vmem:[#allocation5 + $0x378] sm:$0xff] }
 0x634   : > { %v940_v41 = vpop.permute.xlu1 %939  ;;  %v934_v42 = vpop.permute.xlu0 %933  ;;  %2300 = vmatprep.subr.bf16.mxu1 %v2299_v29  ;;  %v2341_v29 = vpack.c.bf16 %v1069_v21, %v1068_v17  ;;  %v2343_v34 = vpack.c.bf16 %v1087_v27, %v1086_v25  ;;  %v1100_v21 = vld [vmem:[#allocation5 + $0x430] sm:$0xff]  ;;  %v1103_v27 = vld [vmem:[#allocation5 + $0x448] sm:$0xff] }
 0x635   : > { %v945_v48 = vsel %vm263_vm2, %v934_v42, %v940_v41  ;;  %v947_v2 = vsel %vm266_vm3, %v934_v42, %v940_v41  ;;  %v2317_v41 = vpack.c.bf16 %v1041_v32, %v1040_v31  ;;  %v2345_v42 = vpack.c.bf16 %v1071_v36, %v1070_v33  ;;  %v1106_v32 = vld [vmem:[#allocation5 + $0x460] sm:$0xff]  ;;  %v1107_v33 = vld [vmem:[#allocation5 + $0x468] sm:$0xff]  ;;  %v1109_v36 = vld [vmem:[#allocation5 + $0x478] sm:$0xff] }
 0x636   : > { %1249 = vmatprep.mubr.f32.mxu0 %v945_v48  ;;  %v1060_v48 = vld [vmem:[#allocation5 + $0x2f0] sm:$0xff] }
 0x637   : > { %2302 = vmatpush3.bf16.msra.mxu1 %v2301_v40  ;;  %1250 = vmatmul.mubr.f32.vlgmr.msra.gmra.mrb[10].mxu0 %v931_v53  ;;  %v1089_v40 = vld [vmem:[#allocation5 + $0x3d8] sm:$0xff]  ;;  %v2349_v53 = vpack.c.bf16 %v1073_v47, %v1072_v45 }
 0x638   : > { %2330 = vmatpush3.bf16.msra.mxu0 %v2329_v43  ;;  %v926_v44 = vpop.permute.xlu1 %925  ;;  %v920_v55 = vpop.permute.xlu0 %919  ;;  %2304 = vmatprep.subr.bf16.mxu1 %v2303_v26  ;;  %v2319_v43 = vpack.c.bf16 %v1059_v38, %v1058_v37  ;;  %v1043_v26 = vld [vmem:[#allocation5 + $0x268] sm:$0xff]  ;;  %v2347_v46 = vpack.c.bf16 %v1089_v40, %v1088_v39 }
 0x639   : > { %v930_v60 = vsel %vm263_vm2, %v920_v55, %v926_v44  ;;  %2332 = vmatprep.subr.bf16.mxu0 %v2331_v49  ;;  %v932_v24 = vsel %vm266_vm3, %v920_v55, %v926_v44  ;;  %v1061_v49 = vld [vmem:[#allocation5 + $0x2f8] sm:$0xff]  ;;  %v1074_v44 = vld [vmem:[#allocation5 + $0x360] sm:$0xff]  ;;  %v2351_v55 = vpack.c.bf16 %v1091_v51, %v1090_v50 }
 0x63a   : > { %1180 = vmatmul.mubr.f32.gmra.mrb[10].mxu1 %v930_v60  ;;  %v2323_v54 = vpack.c.bf16 %v1061_v49, %v1060_v48  ;;  %v1093_v60 = vld [vmem:[#allocation5 + $0x3f8] sm:$0xff] }
 0x63b   : > { %2306 = vmatpush3.bf16.msra.mxu1 %v2305_v0  ;;  %1324 = vmatprep.mubr.f32.mxu1 %v947_v2  ;;  %v1045_v0 = vld [vmem:[#allocation5 + $0x278] sm:$0xff]  ;;  %v2355_v2 = vpack.c.bf16 %v1093_v60, %v1092_v10 }
 0x63c   : > { %2334 = vmatpush3.bf16.msra.mxu0 %v2333_v56  ;;  %v2790_v9 = vpop.permute.xlu1 %941  ;;  %v2792_v11 = vpop.permute.xlu0 %935  ;;  %2308 = vmatprep.subr.bf16.mxu1 %v2307_v57  ;;  %v1075_v56 = vld [vmem:[#allocation5 + $0x368] sm:$0xff]  ;;  %v1094_v57 = vld [vmem:[#allocation5 + $0x400] sm:$0xff] }
 0x63d   : > { %v946_v1 = vsel %vm263_vm2, %v2792_v11, %v2790_v9  ;;  %2336 = vmatprep.subr.bf16.mxu0 %v2335_v62  ;;  %v2325_v62 = vpack.c.bf16 %v1045_v0, %v1044_v35  ;;  %v2353_v14 = vpack.c.bf16 %v1075_v56, %v1074_v44  ;;  %v2359_v63 = vpack.c.bf16 %v1095_v59, %v1094_v57 }
 0x63e   : > { %1254 = vmatprep.mubr.f32.mxu0 %v946_v1  ;;  %v948_v17 = vsel %vm266_vm3, %v2792_v11, %v2790_v9  ;;  %v1098_v1 = vld [vmem:[#allocation5 + $0x420] sm:$0xff]  ;;  %v2371_v9 = vpack.c.bf16 %v1101_v22, %v1100_v21 }
 0x63f   : > { %2310 = vmatpush3.bf16.msra.mxu1 %v2309_v3  ;;  %1255 = vmatmul.mubr.f32.gmra.mrb[12].mxu0 %v932_v24  ;;  %v2357_v3 = vpack.c.bf16 %v1077_v4, %v1076_v15  ;;  %v1102_v11 = vld [vmem:[#allocation5 + $0x440] sm:$0xff] }
 0x640   : > { %2338 = vmatpush3.bf16.msra.mxu0 %v2337_v13  ;;  %1399 = vmatprep.mubr.f32.mxu0 %v2772_v20  ;;  %v1042_v20 = vld [vmem:[#allocation5 + $0x260] sm:$0xff]  ;;  %v2363_v13 = vpack.c.bf16 %v1097_v8, %v1096_v6  ;;  %v957_v58 = vpop.permute.xlu1 %956  ;;  %v951_v16 = vpop.permute.xlu0 %950 }
 0x641   : > { %2312 = vmatprep.subr.bf16.mxu1 %v2311_v18  ;;  %2340 = vmatprep.subr.bf16.mxu0 %v2339_v19  ;;  %v2321_v52 = vpack.c.bf16 %v1043_v26, %v1042_v20  ;;  %v1099_v18 = vld [vmem:[#allocation5 + $0x428] sm:$0xff]  ;;  %v962_v23 = vsel %vm263_vm2, %v951_v16, %v957_v58 }
 0x642   : > { %v2367_v19 = vpack.c.bf16 %v1099_v18, %v1098_v1 }
 0x643   : > { %2314 = vmatpush3.bf16.msra.mxu1 %v2313_v28 }
 0x644   : > { %2342 = vmatpush3.bf16.msra.mxu0 %v2341_v29  ;;  %2316 = vmatprep.subr.bf16.mxu1 %v2315_v30  ;;  %v959_v24 = vpop.permute.xlu1 %958  ;;  %v953_v25 = vpop.permute.xlu0 %952  ;;  %v2375_v29 = vpack.c.bf16 %v1103_v27, %v1102_v11  ;;  %v1105_v30 = vld [vmem:[#allocation5 + $0x458] sm:$0xff] }
 0x645   : > { %2344 = vmatprep.subr.bf16.mxu0 %v2343_v34  ;;  %v963_v28 = vsel %vm263_vm2, %v953_v25, %v959_v24  ;;  %v1108_v34 = vld [vmem:[#allocation5 + $0x470] sm:$0xff]  ;;  %v965_v38 = vsel %vm266_vm3, %v953_v25, %v959_v24 }
 0x646   : > { %v2387_v37 = vpack.c.bf16 %v1109_v36, %v1108_v34 }
 0x647   : > { %2318 = vmatpush3.bf16.msra.mxu1 %v2317_v41 }
 0x648   : > { %2346 = vmatpush3.bf16.msra.mxu0 %v2345_v42  ;;  %2320 = vmatprep.subr.bf16.mxu1 %v2319_v43 }
 0x649   : > { %2348 = vmatprep.subr.bf16.mxu0 %v2347_v46 }
 0x64b   : > { %2322 = vmatpush3.bf16.msra.mxu1 %v2321_v52 }
 0x64c   : > { %2350 = vmatpush3.bf16.msra.mxu0 %v2349_v53  ;;  %2324 = vmatprep.subr.bf16.mxu1 %v2323_v54 }
 0x64d   : > { %2352 = vmatprep.subr.bf16.mxu0 %v2351_v55 }
 0x64f   : > { %2326 = vmatpush3.bf16.msra.mxu1 %v2325_v62 }
 0x650   : > { %2354 = vmatpush3.bf16.msra.mxu0 %v2353_v14  ;;  %2360 = vmatprep.subr.bf16.mxu1 %v2359_v63 }
 0x651   : > { %2356 = vmatprep.subr.bf16.mxu0 %v2355_v2 }
 0x652   : > { %1325 = vmatmul.mubr.f32.vlgmr.msra.gmra.mrb[12].mxu1 %v2748_v12  ;;  %v964_v12 = vsel %vm266_vm3, %v951_v16, %v957_v58 }
 0x653   : > { %1329 = vmatprep.mubr.f32.mxu1 %v948_v17  ;;  %2362 = vmatpush3.bf16.msra.mxu1 %v2359_v63 }
 0x654   : > { %2358 = vmatpush3.bf16.msra.mxu0 %v2357_v3  ;;  %2364 = vmatprep.subr.bf16.mxu1 %v2363_v13 }
 0x656   : > { %1330 = vmatmul.mubr.f32.gmra.mrb[14].mxu1 %v2756_v61  ;;  %v1104_v61 = vld [vmem:[#allocation5 + $0x450] sm:$0xff] }
 0x657   : > { %1400 = vmatmul.mubr.f32.vlgmr.msra.gmra.mrb[14].mxu0 %v962_v23  ;;  %2366 = vmatpush3.bf16.msra.mxu1 %v2363_v13  ;;  %v2379_v31 = vpack.c.bf16 %v1105_v30, %v1104_v61 }
 0x658   : > { %2068 = vmatprep.mubr.f32.mxu1 %v964_v12  ;;  %1404 = vmatprep.mubr.f32.mxu0 %v2779_v7  ;;  %v2383_v7 = vpack.c.bf16 %v1107_v33, %v1106_v32 }
 0x659   : > { %2368 = vmatprep.subr.bf16.mxu1 %v2367_v19 }
 0x65b   : > { %1405 = vmatmul.mubr.f32.gmra.mrb[16].mxu0 %v963_v28  ;;  %2370 = vmatpush3.bf16.msra.mxu1 %v2367_v19 }
 0x65c   : > { %2372 = vmatprep.subr.bf16.mxu1 %v2371_v9 }
 0x65f   : > { %2374 = vmatpush3.bf16.msra.mxu1 %v2371_v9 }
 0x660   : > { %2376 = vmatprep.subr.bf16.mxu1 %v2375_v29 }
 0x663   : > { %2378 = vmatpush3.bf16.msra.mxu1 %v2375_v29 }
 0x664   : > { %2380 = vmatprep.subr.bf16.mxu1 %v2379_v31 }
 0x667   : > { %2382 = vmatpush3.bf16.msra.mxu1 %v2379_v31 }
 0x668   : > { %2384 = vmatprep.subr.bf16.mxu1 %v2383_v7 }
 0x66b   : > { %2386 = vmatpush3.bf16.msra.mxu1 %v2383_v7 }
 0x66c   : > { %2388 = vmatprep.subr.bf16.mxu1 %v2387_v37 }
 0x66f   : > { %2390 = vmatpush3.bf16.msra.mxu1 %v2387_v37 }
 0x672   : > { %2069 = vmatmul.mubr.f32.vlgmr.msra.gmra.mrb[16].mxu1 %v965_v38 }
 0x705   : > { %v1863_v39 = vpop.f32.mrb[8].mxu1 }
 0x706   : > { %v1864_v40 = vpop.f32.mrb[9].mxu1 }
 0x707   : > { %v1865_v41 = vadd.f32 %v1864_v40, %v1863_v39 }
 0x70a   : > { %v1901_v42 = vpop.f32.mrb[10].mxu0 }
 0x70b   : > { %v1902_v43 = vpop.f32.mrb[11].mxu0 }
 0x70c   : > { %v1903_v20 = vadd.f32 %v1902_v43, %v1901_v42 }
 0x70d   : > { %v1866_v26 = vpop.f32.mrb[10].mxu1 }
 0x70e   : > { %v1252_v45 = vadd.f32 %v1903_v20, %v1865_v41  ;;  %v1867_v46 = vpop.f32.mrb[11].mxu1 }
 0x70f   : > { %v1868_v47 = vadd.f32 %v1867_v46, %v1866_v26 }
 0x712   : > { %v1904_v48 = vpop.f32.mrb[12].mxu0 }
 0x713   : > { %v1905_v49 = vpop.f32.mrb[13].mxu0 }
 0x714   : > { %v1906_v50 = vadd.f32 %v1905_v49, %v1904_v48 }
 0x716   : > { %v1257_v51 = vadd.f32 %v1906_v50, %v1868_v47 }
 0x725   : > { %v1939_v52 = vpop.f32.mrb[12].mxu1 }
 0x726   : > { %v1940_v53 = vpop.f32.mrb[13].mxu1 }
 0x727   : > { %v1941_v54 = vadd.f32 %v1940_v53, %v1939_v52 }
 0x729   : > { %v1327_v35 = vadd.f32 %v1941_v54, %v1252_v45  ;;  %v1942_v0 = vpop.f32.mrb[14].mxu1 }
 0x72a   : > { %v1943_v44 = vpop.f32.mrb[15].mxu1  ;;  %v1977_v55 = vpop.f32.mrb[14].mxu0 }
 0x72b   : > { %v1944_v56 = vadd.f32 %v1943_v44, %v1942_v0  ;;  %v1978_v57 = vpop.f32.mrb[15].mxu0 }
 0x72c   : > { %v1979_v59 = vadd.f32 %v1978_v57, %v1977_v55 }
 0x72d   : > { %v1332_v10 = vadd.f32 %v1944_v56, %v1257_v51 }
 0x72e   : > { %v1980_v60 = vpop.f32.mrb[16].mxu0  ;;  %v1402_v62 = vadd.f32 %v1979_v59, %v1327_v35 }
 0x72f   : > { %v1981_v14 = vpop.f32.mrb[17].mxu0 }
 0x730   : > { %v1982_v63 = vadd.f32 %v1981_v14, %v1980_v60  ;;  %v2431_v14 = vld [vmem:[%s2634_s24] sm:$0xff] }
 0x732   : > { %v1407_v15 = vadd.f32 %v1982_v63, %v1332_v10 }
 0x745   : > { %v2070_v2 = vpop.f32.mrb[16].mxu1 }
 0x746   : > { %v1482_v4 = vadd.f32 %v2070_v2, %v1407_v15  ;;  %v1476_v6 = vpop.f32.mrb[17].mxu1  ;;  %v2432_v15 = vld [vmem:[%s2634_s24 + $0x8] sm:$0xff] }
 0x747   : > { %v1477_v8 = vadd.f32 %v1476_v6, %v1402_v62 }
 0x748   : > { %1487 = vrot.lane.b32.xlu1 %v1482_v4, %s2510_s26 }
 0x749   : > { %1485 = vrot.lane.b32.xlu0 %v1477_v8, %s2510_s26 }
 0x7ba   : > { %v1488_v3 = vpop.permute.xlu1 %1487 }
 0x7bb   : > { %v1490_v13 = vadd.f32 %v1488_v3, %v1482_v4  ;;  %v1486_v58 = vpop.permute.xlu0 %1485 }
 0x7bc   : > { %v1489_v16 = vadd.f32 %v1486_v58, %v1477_v8 }
 0x7bd   : > { %1493 = vrot.lane.b32.xlu1 %v1490_v13, %s2511_s27 }
 0x7be   : > { %1491 = vrot.lane.b32.xlu0 %v1489_v16, %s2511_s27 }
 0x82f   : > { %v1494_v17 = vpop.permute.xlu1 %1493 }
 0x830   : > { %v1496_v1 = vadd.f32 %v1494_v17, %v1490_v13  ;;  %v1492_v18 = vpop.permute.xlu0 %1491 }
 0x831   : > { %v1495_v19 = vadd.f32 %v1492_v18, %v1489_v16 }
 0x832   : > { %1499 = vrot.lane.b32.xlu1 %v1496_v1, %s2512_s28 }
 0x833   : > { %1497 = vrot.lane.b32.xlu0 %v1495_v19, %s2512_s28 }
 0x8a4   : > { %v1500_v21 = vpop.permute.xlu1 %1499 }
 0x8a5   : > { %v1502_v22 = vadd.f32 %v1500_v21, %v1496_v1  ;;  %v1498_v23 = vpop.permute.xlu0 %1497 }
 0x8a6   : > { %v1501_v24 = vadd.f32 %v1498_v23, %v1495_v19 }
 0x8a7   : > { %1505 = vrot.lane.b32.xlu1 %v1502_v22, %s2513_s29 }
 0x8a8   : > { %1503 = vrot.lane.b32.xlu0 %v1501_v24, %s2513_s29 }
 0x919   : > { %v1506_v25 = vpop.permute.xlu1 %1505 }
 0x91a   : > { %v1508_v12 = vadd.f32 %v1506_v25, %v1502_v22  ;;  %v1504_v9 = vpop.permute.xlu0 %1503 }
 0x91b   : > { %v1507_v11 = vadd.f32 %v1504_v9, %v1501_v24 }
 0x91d   : > { %v1509_v27 = vadd.f32 %v1508_v12, %v1507_v11 }
 0x91f   : > { %v1510_v28 = vrot.slane %v1509_v27, 4 }
 0x921   : > { %v1511_v29 = vadd.f32 %v1510_v28, %v1509_v27 }
 0x923   : > { %v1512_v61 = vrot.slane %v1511_v29, 2 }
 0x925   : > { %v1513_v30 = vadd.f32 %v1512_v61, %v1511_v29 }
 0x927   : > { %v1514_v31 = vrot.slane %v1513_v30, 1 }
 0x929   : > { %v1515_v32 = vadd.f32 %v1514_v31, %v1513_v30 }
 0x92b   : > { %v1516_v33 = vmul.f32 0.00390625, %v1515_v32 }
 0x92d   : > { %v1518_v7 = vsub.f32 %v1482_v4, %v1516_v33  ;;  %v1517_v34 = vsub.f32 %v1477_v8, %v1516_v33 }
 0x92f   : > { %v1520_v36 = vmul.f32 %v1518_v7, %v1518_v7  ;;  %v1519_v37 = vmul.f32 %v1517_v34, %v1517_v34 }
 0x931   : > { %1523 = vrot.lane.b32.xlu1 %v1520_v36, %s2510_s26  ;;  %1521 = vrot.lane.b32.xlu0 %v1519_v37, %s2510_s26 }
 0x9a3   : > { %v1524_v38 = vpop.permute.xlu1 %1523  ;;  %v1522_v39 = vpop.permute.xlu0 %1521 }
 0x9a4   : > { %v1526_v40 = vadd.f32 %v1524_v38, %v1520_v36  ;;  %v1525_v41 = vadd.f32 %v1522_v39, %v1519_v37 }
 0x9a6   : > { %1529 = vrot.lane.b32.xlu1 %v1526_v40, %s2511_s27  ;;  %1527 = vrot.lane.b32.xlu0 %v1525_v41, %s2511_s27 }
 0xa18   : > { %v1530_v42 = vpop.permute.xlu1 %1529  ;;  %v1528_v43 = vpop.permute.xlu0 %1527 }
 0xa19   : > { %v1532_v20 = vadd.f32 %v1530_v42, %v1526_v40  ;;  %v1531_v26 = vadd.f32 %v1528_v43, %v1525_v41 }
 0xa1b   : > { %1535 = vrot.lane.b32.xlu1 %v1532_v20, %s2512_s28  ;;  %1533 = vrot.lane.b32.xlu0 %v1531_v26, %s2512_s28 }
 0xa8d   : > { %v1536_v45 = vpop.permute.xlu1 %1535  ;;  %v1534_v46 = vpop.permute.xlu0 %1533 }
 0xa8e   : > { %v1538_v47 = vadd.f32 %v1536_v45, %v1532_v20  ;;  %v1537_v48 = vadd.f32 %v1534_v46, %v1531_v26 }
 0xa90   : > { %1541 = vrot.lane.b32.xlu1 %v1538_v47, %s2513_s29  ;;  %1539 = vrot.lane.b32.xlu0 %v1537_v48, %s2513_s29 }
 0xb02   : > { %v1542_v49 = vpop.permute.xlu1 %1541  ;;  %v1540_v50 = vpop.permute.xlu0 %1539 }
 0xb03   : > { %v1544_v51 = vadd.f32 %v1542_v49, %v1538_v47  ;;  %v1543_v52 = vadd.f32 %v1540_v50, %v1537_v48 }
 0xb05   : > { %v1545_v53 = vadd.f32 %v1544_v51, %v1543_v52 }
 0xb07   : > { %v1546_v54 = vrot.slane %v1545_v53, 4 }
 0xb09   : > { %v1547_v35 = vadd.f32 %v1546_v54, %v1545_v53 }
 0xb0b   : > { %v1548_v0 = vrot.slane %v1547_v35, 2 }
 0xb0d   : > { %v1549_v44 = vadd.f32 %v1548_v0, %v1547_v35 }
 0xb0f   : > { %v1550_v55 = vrot.slane %v1549_v44, 1 }
 0xb11   : > { %v1551_v56 = vadd.f32 %v1550_v55, %v1549_v44 }
 0xb13   : > { %v1552_v57 = vmul.f32 0.00390625, %v1551_v56 }
 0xb15   : > { %v1553_v59 = vadd.f32 1e-05, %v1552_v57 }
 0xb17   : > { %2429 = vrsqrt.f32 %v1553_v59 }
 0xb21   : > { %v2430_v10 = vpop.eup %2429 }
 0xb22   : > { %v1555_v60 = vmul.f32 %v2430_v10, %v1517_v34  ;;  %v1556_v62 = vmul.f32 %v2430_v10, %v1518_v7 }
 0xb24   : > { %v1557_v63 = vadd.f32 %v2431_v14, %v1555_v60  ;;  %v1558_v2 = vadd.f32 %v2432_v15, %v1556_v62 }
 0xb26   : > { %vm1559_vm6 = vcmp.ge.f32.partialorder %v1557_v63, 0.0  ;;  %vm1560_vm7 = vcmp.ge.f32.partialorder %v1558_v2, 0.0  ;;  %v1561_v4 = vmul.f32 %v1557_v63, %v2743_v5  ;;  %v1562_v6 = vmul.f32 %v1558_v2, %v2743_v5 }
 0xb28   : > { %v1563_v8 = vsel %vm1559_vm6, %v1557_v63, %v1561_v4  ;;  %v1564_v3 = vsel %vm1560_vm7, %v1558_v2, %v1562_v6 }
 0xb29   : > { %1565 = vst [vmem:[%s228_s7] sm:$0xff] %v1563_v8  ;;  %1566 = vst [vmem:[%s228_s7 + $0x8] sm:$0xff] %v1564_v3 }
 0xb2a PF: > { %s17_s17 = sadd.s32 1, %s2503_s17  }
 0xb2b   : > { %p14_p5 = scmp.ge.s32.totalorder %s17_s17, 4  }
 0xb2d   :  { %16 = sbr.rel (!%p14_p5) target bundleno = 4 (0x4), region = 75 }
 0xb34   :  { %1588 = vsyncpa [#allocation4], 1 }
 0xb35   :  { %1590 = vsyncpa [#allocation4 + $0x1], 1 }
 0xb36   :  { %1591 = vsyncpa [#allocation6], 1 }

</bundles_post_ra>
